<compile_context>
chip_gen: v5e
topology: v5e:2x2
jax: 0.10.0
libtpu: 0.0.40
codegen_flags: <defaults>
</compile_context>

<pallas_src>
import jax
import jax.numpy as jnp
from jax.experimental import pallas as pl
from jax.experimental.pallas import tpu as pltpu

# ------------------------- config (small synthetic CLIP) -------------------------
B = 2            # number of prompts
L = 8            # context length (seq)
D = 32           # transformer width
H = 4            # attention heads
HD = D // H      # head dim
LAYERS = 2       # transformer depth
PROJ = 32        # text projection output dim

BT = 1                      # prompts per tile (parallel grid axis); >=8 at real scale
B_TILES = B // BT
BP = max(8, ((BT + 7) // 8) * 8)   # sublane-padded EOT / output staging rows

DTYPE = jnp.float32          # module / activation dtype
W_DTYPE = jnp.bfloat16       # stored weight dtype -> bf16 MXU operands
LN_EPS = 1e-5
NEG_INF = -1e30              # additive mask constant (mask math stays f32)


# ------------------------------- in-kernel helpers --------------------------------
def _layernorm(x, gamma, beta):
    # x, gamma, beta are already f32; statistics in f32.
    m = jnp.mean(x, axis=-1, keepdims=True)
    c = x - m
    v = jnp.mean(c * c, axis=-1, keepdims=True)
    return c * jax.lax.rsqrt(v + LN_EPS) * gamma + beta


# --------------------------------- fused kernel ------------------------------------
def _encoder_kernel(eot_ref,                                   # SMEM scalar prefetch: (B,) i32
                    prompts_ref, pos_ref,                      # (BT, L, D) f32, (L, D) f32
                    ln1_g_ref, ln1_b_ref,
                    w_q_ref, b_q_ref, w_k_ref, b_k_ref, w_v_ref, b_v_ref,
                    w_o_ref, b_o_ref,
                    ln2_g_ref, ln2_b_ref,
                    w_fc_ref, b_fc_ref, w_pr_ref, b_pr_ref,
                    lnf_g_ref, lnf_b_ref, proj_ref,            # ln_final, text_projection (bf16)
                    out_ref,                                   # (1, BP, PROJ)
                    x_scr, mask_scr, eot_scr):                 # VMEM scratch
    bt = pl.program_id(0)
    layer = pl.program_id(1)
    scale = 1.0 / (HD ** 0.5)

    # ---- layer 0 (per prompt tile): x = prompts + pos (broadcast); build causal mask ----
    @pl.when(layer == 0)
    def _init():
        x_scr[...] = prompts_ref[...].astype(jnp.float32) + pos_ref[...]
        row = jax.lax.broadcasted_iota(jnp.int32, (L, L), 0)
        col = jax.lax.broadcasted_iota(jnp.int32, (L, L), 1)
        mask_scr[...] = jnp.where(col <= row, 0.0, NEG_INF).astype(jnp.float32)

    # ------------------------- residual attention block ---------------------------
    x = x_scr[...]                                                        # (BT, L, D) f32
    h16 = _layernorm(x, ln1_g_ref[0], ln1_b_ref[0]).astype(jnp.bfloat16)  # cast once, reused
    mask = mask_scr[...]                                                  # (L, L) f32

    o_acc = jnp.zeros((BT, L, D), jnp.float32)
    # TODO(synk): at real CLIP H (8/12) switch this static unroll to lax.fori_loop(unroll=True).
    for hh in range(H):
        q = jnp.einsum("bld,dk->blk", h16, w_q_ref[0, hh],
                       preferred_element_type=jnp.float32) + b_q_ref[0, hh]
        k = jnp.einsum("bld,dk->blk", h16, w_k_ref[0, hh],
                       preferred_element_type=jnp.float32) + b_k_ref[0, hh]
        v = jnp.einsum("bld,dk->blk", h16, w_v_ref[0, hh],
                       preferred_element_type=jnp.float32) + b_v_ref[0, hh]
        s = jnp.einsum("bqk,bmk->bqm",
                       (q * scale).astype(jnp.bfloat16), k.astype(jnp.bfloat16),
                       preferred_element_type=jnp.float32)                # (BT, L, L) f32
        s = s + mask
        s = s - jnp.max(s, axis=-1, keepdims=True)                        # f32 softmax stats
        p = jnp.exp(s)
        p = p * pl.reciprocal(jnp.sum(p, axis=-1, keepdims=True), approx=True)
        o_h = jnp.einsum("bqm,bmk->bqk",
                         p.astype(jnp.bfloat16), v.astype(jnp.bfloat16),
                         preferred_element_type=jnp.float32)              # (BT, L, HD)
        # fold the output projection per head -> no (M, D) attention scratch buffer
        o_acc = o_acc + jnp.einsum("blk,kd->bld",
                                   o_h.astype(jnp.bfloat16), w_o_ref[0, hh],
                                   preferred_element_type=jnp.float32)
    x = x + o_acc + b_o_ref[0]                                            # residual add (f32)

    # ----------------------------- residual MLP block ------------------------------
    h16 = _layernorm(x, ln2_g_ref[0], ln2_b_ref[0]).astype(jnp.bfloat16)
    g = jnp.einsum("bld,df->blf", h16, w_fc_ref[0],
                   preferred_element_type=jnp.float32) + b_fc_ref[0]
    g = g * jax.nn.sigmoid(1.702 * g)                                     # QuickGELU (f32, EUP)
    m = jnp.einsum("blf,fd->bld", g.astype(jnp.bfloat16), w_pr_ref[0],
                   preferred_element_type=jnp.float32) + b_pr_ref[0]
    x = x + m
    x_scr[...] = x                                                        # carry to next layer

    # ---- last layer: batched EOT gather -> ln_final on B rows -> one dense matmul ----
    @pl.when(layer == pl.num_programs(1) - 1)
    def _final():
        eot_scr[...] = jnp.zeros_like(eot_scr)                            # keep pad rows finite
        for bb in range(BT):                                              # tiny static loop
            idx = eot_ref[bt * BT + bb]                                   # SMEM scalar
            row = x_scr[pl.ds(bb, 1), pl.ds(idx, 1), :]                   # (1, 1, D) gather
            eot_scr[pl.ds(bb, 1), :] = row.reshape(1, D)
        rows = _layernorm(eot_scr[...], lnf_g_ref[...], lnf_b_ref[...])   # (BP, D) f32
        out_ref[0] = jnp.dot(rows.astype(jnp.bfloat16), proj_ref[...],
                             preferred_element_type=jnp.float32).astype(out_ref.dtype)


# --------------------------------- parameters -------------------------------------
def init_params(key):
    ks = jax.random.split(key, 20)

    def w(k, shape, scale=0.02):
        return (scale * jax.random.normal(k, shape)).astype(W_DTYPE)      # bf16 weights

    def bvec(k, shape, scale=0.01):
        return (scale * jax.random.normal(k, shape)).astype(jnp.float32)  # f32 biases

    def gamma(k, shape):
        return (1.0 + 0.05 * jax.random.normal(k, shape)).astype(jnp.float32)

    return {
        "pos_emb": (0.01 * jax.random.normal(ks[0], (L, D))).astype(jnp.float32),
        "lnf_g": gamma(ks[1], (1, D)),
        "lnf_b": bvec(ks[2], (1, D)),
        "text_projection": w(ks[3], (D, PROJ), scale=D ** -0.5),
        # per-layer weights stacked along a leading LAYERS axis, heads pre-split
        "ln1_g": gamma(ks[4], (LAYERS, 1, D)),
        "ln1_b": bvec(ks[5], (LAYERS, 1, D)),
        "w_q": w(ks[6], (LAYERS, H, D, HD)),
        "b_q": bvec(ks[7], (LAYERS, H, 1, HD)),
        "w_k": w(ks[8], (LAYERS, H, D, HD)),
        "b_k": bvec(ks[9], (LAYERS, H, 1, HD)),
        "w_v": w(ks[10], (LAYERS, H, D, HD)),
        "b_v": bvec(ks[11], (LAYERS, H, 1, HD)),
        "w_o": w(ks[12], (LAYERS, H, HD, D)),
        "b_o": bvec(ks[13], (LAYERS, 1, D)),
        "ln2_g": gamma(ks[14], (LAYERS, 1, D)),
        "ln2_b": bvec(ks[15], (LAYERS, 1, D)),
        "w_fc": w(ks[16], (LAYERS, D, 4 * D)),
        "b_fc": bvec(ks[17], (LAYERS, 1, 4 * D)),
        "w_pr": w(ks[18], (LAYERS, 4 * D, D)),
        "b_pr": bvec(ks[19], (LAYERS, 1, D)),
    }


# --------------------------------- forward pass ------------------------------------
@jax.jit
def text_encoder_forward(params, prompts, tokenized_prompts):
    # EOT position per prompt (scalar prefetch -> SMEM; pooling happens in-kernel)
    eot_idx = jnp.argmax(tokenized_prompts, axis=-1).astype(jnp.int32)    # (B,)

    def full_spec(*dims):
        return pl.BlockSpec(dims, lambda bt, li, eot: (0,) * len(dims))

    def per_layer(*dims):
        return pl.BlockSpec((1,) + dims, lambda bt, li, eot: (li,) + (0,) * len(dims))

    grid_spec = pltpu.PrefetchScalarGridSpec(
        num_scalar_prefetch=1,
        grid=(B_TILES, LAYERS),
        in_specs=[
            pl.BlockSpec((BT, L, D), lambda bt, li, eot: (bt, 0, 0)),     # prompts (per tile)
            full_spec(L, D),                                              # positional embedding
            per_layer(1, D), per_layer(1, D),                             # ln1 gamma / beta
            per_layer(H, D, HD), per_layer(H, 1, HD),                     # w_q / b_q
            per_layer(H, D, HD), per_layer(H, 1, HD),                     # w_k / b_k
            per_layer(H, D, HD), per_layer(H, 1, HD),                     # w_v / b_v
            per_layer(H, HD, D), per_layer(1, D),                         # w_o / b_o
            per_layer(1, D), per_layer(1, D),                             # ln2 gamma / beta
            per_layer(D, 4 * D), per_layer(1, 4 * D),                     # w_fc / b_fc
            per_layer(4 * D, D), per_layer(1, D),                         # w_proj / b_proj
            full_spec(1, D), full_spec(1, D),                             # ln_final gamma / beta
            full_spec(D, PROJ),                                           # text_projection
        ],
        out_specs=pl.BlockSpec((1, BP, PROJ), lambda bt, li, eot: (bt, 0, 0)),
        scratch_shapes=[
            pltpu.VMEM((BT, L, D), jnp.float32),     # running residual (per tile)
            pltpu.VMEM((L, L), jnp.float32),         # additive causal mask (built once per tile)
            pltpu.VMEM((BP, D), jnp.float32),        # EOT row staging (sublane-padded)
        ],
    )

    out = pl.pallas_call(
        _encoder_kernel,
        out_shape=jax.ShapeDtypeStruct((B_TILES, BP, PROJ), DTYPE),
        grid_spec=grid_spec,
        compiler_params=pltpu.CompilerParams(
            # prompt tiles run in parallel (megacore / v7x); layers are a sequential carry
            dimension_semantics=("parallel", "arbitrary"),
            vmem_limit_bytes=64 * 1024 * 1024,       # v5e scoped default (16 MiB) is too small at scale
        ),
    )(eot_idx, prompts, params["pos_emb"],
      params["ln1_g"], params["ln1_b"],
      params["w_q"], params["b_q"], params["w_k"], params["b_k"],
      params["w_v"], params["b_v"], params["w_o"], params["b_o"],
      params["ln2_g"], params["ln2_b"],
      params["w_fc"], params["b_fc"], params["w_pr"], params["b_pr"],
      params["lnf_g"], params["lnf_b"], params["text_projection"])

    # (B_TILES, BP, PROJ) -> (B, PROJ): drop sublane padding rows
    return out[:, :BT, :].reshape(B, PROJ)


# ----------------------------- pure-JAX reference ----------------------------------
def _reference_forward(params, prompts, tokenized_prompts):
    def ln(x, g, b):
        m = jnp.mean(x, -1, keepdims=True)
        v = jnp.mean((x - m) ** 2, -1, keepdims=True)
        return (x - m) * jax.lax.rsqrt(v + LN_EPS) * g + b

    f32 = lambda t: t.astype(jnp.float32)
    x = prompts.astype(jnp.float32) + f32(params["pos_emb"])[None]
    scale = 1.0 / (HD ** 0.5)
    causal = jnp.tril(jnp.ones((L, L), bool))
    for i in range(LAYERS):
        h = ln(x, f32(params["ln1_g"][i]), f32(params["ln1_b"][i]))
        o = jnp.zeros_like(x)
        for hh in range(H):
            q = h @ f32(params["w_q"][i, hh]) + f32(params["b_q"][i, hh])
            k = h @ f32(params["w_k"][i, hh]) + f32(params["b_k"][i, hh])
            v = h @ f32(params["w_v"][i, hh]) + f32(params["b_v"][i, hh])
            s = jnp.einsum("bqk,bmk->bqm", q * scale, k)
            s = jnp.where(causal[None], s, NEG_INF)
            p = jax.nn.softmax(s, axis=-1)
            o = o + jnp.einsum("bqm,bmk->bqk", p, v) @ f32(params["w_o"][i, hh])
        x = x + o + f32(params["b_o"][i])
        h = ln(x, f32(params["ln2_g"][i]), f32(params["ln2_b"][i]))
        h = h @ f32(params["w_fc"][i]) + f32(params["b_fc"][i])
        h = h * jax.nn.sigmoid(1.702 * h)
        x = x + h @ f32(params["w_pr"][i]) + f32(params["b_pr"][i])
    x = ln(x, f32(params["lnf_g"]), f32(params["lnf_b"]))
    eot = jnp.argmax(tokenized_prompts, axis=-1)
    return x[jnp.arange(x.shape[0]), eot] @ f32(params["text_projection"])


# ------------------------------------- main -----------------------------------------
if __name__ == "__main__":
    key = jax.random.PRNGKey(0)
    k_param, k_prompt, k_tok = jax.random.split(key, 3)

    params = init_params(k_param)

    # prompts: learned context embeddings, shape (B, L, D)
    prompts = (0.02 * jax.random.normal(k_prompt, (B, L, D))).astype(DTYPE)

    # tokenized_prompts: integer token ids (B, L); large EOT id so argmax picks a
    # deterministic position per row (matches CLIP's EOT pooling).
    tokenized_prompts = jax.random.randint(k_tok, (B, L), 1, 100, dtype=jnp.int32)
    eot_positions = jnp.array([5, 7], dtype=jnp.int32)
    tokenized_prompts = tokenized_prompts.at[jnp.arange(B), eot_positions].set(49407)

    out = text_encoder_forward(params, prompts, tokenized_prompts)
    out = jax.block_until_ready(out)

    ref = _reference_forward(params, prompts, tokenized_prompts)

    assert out.shape == (B, PROJ)
    assert bool(jnp.all(jnp.isfinite(out)))
    # bf16 MXU operands (kernel) vs f32 math on the same bf16-valued weights (reference)
    max_err = float(jnp.max(jnp.abs(out - ref)))
    assert jnp.allclose(out, ref, atol=5e-2, rtol=5e-2), f"max abs err {max_err}"
    print("KERNEL_OK")
</pallas_src>

<mosaic_0001>
module attributes {stable_mosaic.version = 11 : i64} {
  func.func @_encoder_kernel(%arg0: i32, %arg1: i32, %arg2: memref<2xi32, #tpu.memory_space<smem>>, %arg3: memref<1x8x32xf32, #tpu.memory_space<vmem>>, %arg4: memref<8x32xf32, #tpu.memory_space<vmem>>, %arg5: memref<1x1x32xf32, #tpu.memory_space<vmem>>, %arg6: memref<1x1x32xf32, #tpu.memory_space<vmem>>, %arg7: memref<1x4x32x8xbf16, #tpu.memory_space<vmem>>, %arg8: memref<1x4x1x8xf32, #tpu.memory_space<vmem>>, %arg9: memref<1x4x32x8xbf16, #tpu.memory_space<vmem>>, %arg10: memref<1x4x1x8xf32, #tpu.memory_space<vmem>>, %arg11: memref<1x4x32x8xbf16, #tpu.memory_space<vmem>>, %arg12: memref<1x4x1x8xf32, #tpu.memory_space<vmem>>, %arg13: memref<1x4x8x32xbf16, #tpu.memory_space<vmem>>, %arg14: memref<1x1x32xf32, #tpu.memory_space<vmem>>, %arg15: memref<1x1x32xf32, #tpu.memory_space<vmem>>, %arg16: memref<1x1x32xf32, #tpu.memory_space<vmem>>, %arg17: memref<1x32x128xbf16, #tpu.memory_space<vmem>>, %arg18: memref<1x1x128xf32, #tpu.memory_space<vmem>>, %arg19: memref<1x128x32xbf16, #tpu.memory_space<vmem>>, %arg20: memref<1x1x32xf32, #tpu.memory_space<vmem>>, %arg21: memref<1x32xf32, #tpu.memory_space<vmem>>, %arg22: memref<1x32xf32, #tpu.memory_space<vmem>>, %arg23: memref<32x32xbf16, #tpu.memory_space<vmem>>, %arg24: memref<1x8x32xf32, #tpu.memory_space<vmem>>, %arg25: memref<1x8x32xf32, #tpu.memory_space<vmem>>, %arg26: memref<8x8xf32, #tpu.memory_space<vmem>>, %arg27: memref<8x32xf32, #tpu.memory_space<vmem>>) attributes {dimension_semantics = [#tpu.dimension_semantics<parallel>, #tpu.dimension_semantics<arbitrary>], iteration_bounds = array<i64: 2, 2>, scalar_prefetch = 1 : i64, scratch_operands = 3 : i64, tpu.core_type = #tpu.core_type<tc>, window_params = [{transform_indices = @transform_0, window_bounds = array<i64: 1, 8, 32>}, {pipeline_mode = #tpu.pipeline_mode<synchronous>, transform_indices = @transform_1, window_bounds = array<i64: 8, 32>}, {transform_indices = @transform_2, window_bounds = array<i64: 1, 1, 32>}, {transform_indices = @transform_3, window_bounds = array<i64: 1, 1, 32>}, {transform_indices = @transform_4, window_bounds = array<i64: 1, 4, 32, 8>}, {transform_indices = @transform_5, window_bounds = array<i64: 1, 4, 1, 8>}, {transform_indices = @transform_6, window_bounds = array<i64: 1, 4, 32, 8>}, {transform_indices = @transform_7, window_bounds = array<i64: 1, 4, 1, 8>}, {transform_indices = @transform_8, window_bounds = array<i64: 1, 4, 32, 8>}, {transform_indices = @transform_9, window_bounds = array<i64: 1, 4, 1, 8>}, {transform_indices = @transform_10, window_bounds = array<i64: 1, 4, 8, 32>}, {transform_indices = @transform_11, window_bounds = array<i64: 1, 1, 32>}, {transform_indices = @transform_12, window_bounds = array<i64: 1, 1, 32>}, {transform_indices = @transform_13, window_bounds = array<i64: 1, 1, 32>}, {transform_indices = @transform_14, window_bounds = array<i64: 1, 32, 128>}, {transform_indices = @transform_15, window_bounds = array<i64: 1, 1, 128>}, {transform_indices = @transform_16, window_bounds = array<i64: 1, 128, 32>}, {transform_indices = @transform_17, window_bounds = array<i64: 1, 1, 32>}, {pipeline_mode = #tpu.pipeline_mode<synchronous>, transform_indices = @transform_18, window_bounds = array<i64: 1, 32>}, {pipeline_mode = #tpu.pipeline_mode<synchronous>, transform_indices = @transform_19, window_bounds = array<i64: 1, 32>}, {pipeline_mode = #tpu.pipeline_mode<synchronous>, transform_indices = @transform_20, window_bounds = array<i64: 32, 32>}, {transform_indices = @transform_21, window_bounds = array<i64: 1, 8, 32>}]} {
    %c0_i32 = arith.constant 0 : i32
    %0 = arith.cmpi eq, %arg1, %c0_i32 : i32
    %1 = arith.extui %0 : i1 to i32
    %c0_i32_0 = arith.constant 0 : i32
    %2 = arith.cmpi ne, %1, %c0_i32_0 : i32
    scf.if %2 {
      %c0_195 = arith.constant 0 : index
      %c0_196 = arith.constant 0 : index
      %c0_197 = arith.constant 0 : index
      %292 = vector.load %arg3[%c0_195, %c0_196, %c0_197] : memref<1x8x32xf32, #tpu.memory_space<vmem>>, vector<1x8x32xf32>
      %c0_198 = arith.constant 0 : index
      %c0_199 = arith.constant 0 : index
      %293 = vector.load %arg4[%c0_198, %c0_199] : memref<8x32xf32, #tpu.memory_space<vmem>>, vector<8x32xf32>
      %294 = vector.shape_cast %293 : vector<8x32xf32> to vector<1x8x32xf32>
      %295 = arith.addf %292, %294 : vector<1x8x32xf32>
      %c0_200 = arith.constant 0 : index
      %c0_201 = arith.constant 0 : index
      %c0_202 = arith.constant 0 : index
      %296 = vector.load %arg25[%c0_200, %c0_201, %c0_202] : memref<1x8x32xf32, #tpu.memory_space<vmem>>, vector<1x8x32xf32>
      tpu.vector_store %arg25[%c0_200, %c0_201, %c0_202], %295 {strides = array<i32>} : memref<1x8x32xf32, #tpu.memory_space<vmem>>, vector<1x8x32xf32>,
      %297 = tpu.iota {dimensions = array<i32: 0>} : vector<8x8xi32>
      %298 = tpu.iota {dimensions = array<i32: 1>} : vector<8x8xi32>
      %299 = arith.cmpi sle, %298, %297 : vector<8x8xi32>
      %cst_203 = arith.constant 0.000000e+00 : f32
      %cst_204 = arith.constant -1.000000e+30 : f32
      %300 = vector.broadcast %cst_203 : f32 to vector<8x8xf32>
      %301 = vector.broadcast %cst_204 : f32 to vector<8x8xf32>
      %302 = arith.select %299, %300, %301 : vector<8x8xi1>, vector<8x8xf32>
      %c0_205 = arith.constant 0 : index
      %c0_206 = arith.constant 0 : index
      %303 = vector.load %arg26[%c0_205, %c0_206] : memref<8x8xf32, #tpu.memory_space<vmem>>, vector<8x8xf32>
      tpu.vector_store %arg26[%c0_205, %c0_206], %302 {strides = array<i32>} : memref<8x8xf32, #tpu.memory_space<vmem>>, vector<8x8xf32>,
    } else {
    }
    %c0 = arith.constant 0 : index
    %c0_1 = arith.constant 0 : index
    %c0_2 = arith.constant 0 : index
    %3 = vector.load %arg25[%c0, %c0_1, %c0_2] : memref<1x8x32xf32, #tpu.memory_space<vmem>>, vector<1x8x32xf32>
    %c0_3 = arith.constant 0 : index
    %c0_4 = arith.constant 0 : index
    %c0_5 = arith.constant 0 : index
    %4 = vector.load %arg5[%c0_3, %c0_4, %c0_5] : memref<1x1x32xf32, #tpu.memory_space<vmem>>, vector<1x1x32xf32>
    %5 = vector.shape_cast %4 : vector<1x1x32xf32> to vector<1x32xf32>
    %c0_6 = arith.constant 0 : index
    %c0_7 = arith.constant 0 : index
    %c0_8 = arith.constant 0 : index
    %6 = vector.load %arg6[%c0_6, %c0_7, %c0_8] : memref<1x1x32xf32, #tpu.memory_space<vmem>>, vector<1x1x32xf32>
    %7 = vector.shape_cast %6 : vector<1x1x32xf32> to vector<1x32xf32>
    %cst = arith.constant dense<0.000000e+00> : vector<1x8xf32>
    %8 = vector.multi_reduction <add>, %3, %cst [2] : vector<1x8x32xf32> to vector<1x8xf32>
    %9 = vector.shape_cast %8 : vector<1x8xf32> to vector<1x8x1xf32>
    %cst_9 = arith.constant 3.200000e+01 : f32
    %10 = vector.broadcast %cst_9 : f32 to vector<1x8x1xf32>
    %11 = arith.divf %9, %10 : vector<1x8x1xf32>
    %12 = vector.broadcast %11 : vector<1x8x1xf32> to vector<1x8x32xf32>
    %13 = arith.subf %3, %12 : vector<1x8x32xf32>
    %14 = arith.mulf %13, %13 : vector<1x8x32xf32>
    %cst_10 = arith.constant dense<0.000000e+00> : vector<1x8xf32>
    %15 = vector.multi_reduction <add>, %14, %cst_10 [2] : vector<1x8x32xf32> to vector<1x8xf32>
    %16 = vector.shape_cast %15 : vector<1x8xf32> to vector<1x8x1xf32>
    %cst_11 = arith.constant 3.200000e+01 : f32
    %17 = vector.broadcast %cst_11 : f32 to vector<1x8x1xf32>
    %18 = arith.divf %16, %17 : vector<1x8x1xf32>
    %cst_12 = arith.constant 9.99999974E-6 : f32
    %19 = vector.broadcast %cst_12 : f32 to vector<1x8x1xf32>
    %20 = arith.addf %18, %19 : vector<1x8x1xf32>
    %21 = math.rsqrt %20 : vector<1x8x1xf32>
    %22 = vector.broadcast %21 : vector<1x8x1xf32> to vector<1x8x32xf32>
    %23 = arith.mulf %13, %22 : vector<1x8x32xf32>
    %24 = vector.shape_cast %5 : vector<1x32xf32> to vector<1x1x32xf32>
    %25 = vector.broadcast %24 : vector<1x1x32xf32> to vector<1x8x32xf32>
    %26 = arith.mulf %23, %25 : vector<1x8x32xf32>
    %27 = vector.shape_cast %7 : vector<1x32xf32> to vector<1x1x32xf32>
    %28 = vector.broadcast %27 : vector<1x1x32xf32> to vector<1x8x32xf32>
    %29 = arith.addf %26, %28 : vector<1x8x32xf32>
    %30 = arith.truncf %29 : vector<1x8x32xf32> to vector<1x8x32xbf16>
    %c0_13 = arith.constant 0 : index
    %c0_14 = arith.constant 0 : index
    %31 = vector.load %arg26[%c0_13, %c0_14] : memref<8x8xf32, #tpu.memory_space<vmem>>, vector<8x8xf32>
    %cst_15 = arith.constant 0.000000e+00 : f32
    %32 = vector.broadcast %cst_15 : f32 to vector<1x8x32xf32>
    %c0_16 = arith.constant 0 : index
    %c0_17 = arith.constant 0 : index
    %c0_18 = arith.constant 0 : index
    %c0_19 = arith.constant 0 : index
    %33 = vector.load %arg7[%c0_16, %c0_17, %c0_18, %c0_19] : memref<1x4x32x8xbf16, #tpu.memory_space<vmem>>, vector<1x1x32x8xbf16>
    %34 = vector.shape_cast %33 : vector<1x1x32x8xbf16> to vector<32x8xbf16>
    "tpu.trace_start"() <{level = 10 : i32, message = "bld,dk->blk"}> : () -> ()
    %cst_20 = arith.constant dense<0.000000e+00> : vector<1x8x8xf32>
    %35 = tpu.matmul %30, %34, %cst_20 {dimension_numbers = #tpu.dot_dimension_numbers<[2], [0], [0, 1], [1], [0, 0, 0, 1, 1, 1], [], []>} : vector<1x8x32xbf16>, vector<32x8xbf16>, vector<1x8x8xf32> -> vector<1x8x8xf32>
    "tpu.trace_stop"() : () -> ()
    %c0_21 = arith.constant 0 : index
    %c0_22 = arith.constant 0 : index
    %c0_23 = arith.constant 0 : index
    %c0_24 = arith.constant 0 : index
    %36 = vector.load %arg8[%c0_21, %c0_22, %c0_23, %c0_24] : memref<1x4x1x8xf32, #tpu.memory_space<vmem>>, vector<1x1x1x8xf32>
    %37 = vector.shape_cast %36 : vector<1x1x1x8xf32> to vector<1x8xf32>
    %38 = vector.shape_cast %37 : vector<1x8xf32> to vector<1x1x8xf32>
    %39 = vector.broadcast %38 : vector<1x1x8xf32> to vector<1x8x8xf32>
    %40 = arith.addf %35, %39 : vector<1x8x8xf32>
    %c0_25 = arith.constant 0 : index
    %c0_26 = arith.constant 0 : index
    %c0_27 = arith.constant 0 : index
    %c0_28 = arith.constant 0 : index
    %41 = vector.load %arg9[%c0_25, %c0_26, %c0_27, %c0_28] : memref<1x4x32x8xbf16, #tpu.memory_space<vmem>>, vector<1x1x32x8xbf16>
    %42 = vector.shape_cast %41 : vector<1x1x32x8xbf16> to vector<32x8xbf16>
    "tpu.trace_start"() <{level = 10 : i32, message = "bld,dk->blk"}> : () -> ()
    %cst_29 = arith.constant dense<0.000000e+00> : vector<1x8x8xf32>
    %43 = tpu.matmul %30, %42, %cst_29 {dimension_numbers = #tpu.dot_dimension_numbers<[2], [0], [0, 1], [1], [0, 0, 0, 1, 1, 1], [], []>} : vector<1x8x32xbf16>, vector<32x8xbf16>, vector<1x8x8xf32> -> vector<1x8x8xf32>
    "tpu.trace_stop"() : () -> ()
    %c0_30 = arith.constant 0 : index
    %c0_31 = arith.constant 0 : index
    %c0_32 = arith.constant 0 : index
    %c0_33 = arith.constant 0 : index
    %44 = vector.load %arg10[%c0_30, %c0_31, %c0_32, %c0_33] : memref<1x4x1x8xf32, #tpu.memory_space<vmem>>, vector<1x1x1x8xf32>
    %45 = vector.shape_cast %44 : vector<1x1x1x8xf32> to vector<1x8xf32>
    %46 = vector.shape_cast %45 : vector<1x8xf32> to vector<1x1x8xf32>
    %47 = vector.broadcast %46 : vector<1x1x8xf32> to vector<1x8x8xf32>
    %48 = arith.addf %43, %47 : vector<1x8x8xf32>
    %c0_34 = arith.constant 0 : index
    %c0_35 = arith.constant 0 : index
    %c0_36 = arith.constant 0 : index
    %c0_37 = arith.constant 0 : index
    %49 = vector.load %arg11[%c0_34, %c0_35, %c0_36, %c0_37] : memref<1x4x32x8xbf16, #tpu.memory_space<vmem>>, vector<1x1x32x8xbf16>
    %50 = vector.shape_cast %49 : vector<1x1x32x8xbf16> to vector<32x8xbf16>
    "tpu.trace_start"() <{level = 10 : i32, message = "bld,dk->blk"}> : () -> ()
    %cst_38 = arith.constant dense<0.000000e+00> : vector<1x8x8xf32>
    %51 = tpu.matmul %30, %50, %cst_38 {dimension_numbers = #tpu.dot_dimension_numbers<[2], [0], [0, 1], [1], [0, 0, 0, 1, 1, 1], [], []>} : vector<1x8x32xbf16>, vector<32x8xbf16>, vector<1x8x8xf32> -> vector<1x8x8xf32>
    "tpu.trace_stop"() : () -> ()
    %c0_39 = arith.constant 0 : index
    %c0_40 = arith.constant 0 : index
    %c0_41 = arith.constant 0 : index
    %c0_42 = arith.constant 0 : index
    %52 = vector.load %arg12[%c0_39, %c0_40, %c0_41, %c0_42] : memref<1x4x1x8xf32, #tpu.memory_space<vmem>>, vector<1x1x1x8xf32>
    %53 = vector.shape_cast %52 : vector<1x1x1x8xf32> to vector<1x8xf32>
    %54 = vector.shape_cast %53 : vector<1x8xf32> to vector<1x1x8xf32>
    %55 = vector.broadcast %54 : vector<1x1x8xf32> to vector<1x8x8xf32>
    %56 = arith.addf %51, %55 : vector<1x8x8xf32>
    %cst_43 = arith.constant 0.353553385 : f32
    %57 = vector.broadcast %cst_43 : f32 to vector<1x8x8xf32>
    %58 = arith.mulf %40, %57 : vector<1x8x8xf32>
    %59 = arith.truncf %58 : vector<1x8x8xf32> to vector<1x8x8xbf16>
    %60 = arith.truncf %48 : vector<1x8x8xf32> to vector<1x8x8xbf16>
    "tpu.trace_start"() <{level = 10 : i32, message = "bqk,bmk->bqm"}> : () -> ()
    %cst_44 = arith.constant dense<0.000000e+00> : vector<1x8x8xf32>
    %61 = tpu.matmul %59, %60, %cst_44 {dimension_numbers = #tpu.dot_dimension_numbers<[2], [2], [1], [1], [0, 0, 0, 1, 1, 1], [0], [0]>} : vector<1x8x8xbf16>, vector<1x8x8xbf16>, vector<1x8x8xf32> -> vector<1x8x8xf32>
    "tpu.trace_stop"() : () -> ()
    %62 = vector.shape_cast %31 : vector<8x8xf32> to vector<1x8x8xf32>
    %63 = arith.addf %61, %62 : vector<1x8x8xf32>
    %cst_45 = arith.constant dense<0xFF800000> : vector<1x8xf32>
    %64 = vector.multi_reduction <maximumf>, %63, %cst_45 [2] : vector<1x8x8xf32> to vector<1x8xf32>
    %65 = vector.shape_cast %64 : vector<1x8xf32> to vector<1x8x1xf32>
    %66 = vector.broadcast %65 : vector<1x8x1xf32> to vector<1x8x8xf32>
    %67 = arith.subf %63, %66 : vector<1x8x8xf32>
    %68 = math.exp %67 : vector<1x8x8xf32>
    %cst_46 = arith.constant dense<0.000000e+00> : vector<1x8xf32>
    %69 = vector.multi_reduction <add>, %68, %cst_46 [2] : vector<1x8x8xf32> to vector<1x8xf32>
    %70 = vector.shape_cast %69 : vector<1x8xf32> to vector<1x8x1xf32>
    %71 = tpu.reciprocal %70 {approx = true} : vector<1x8x1xf32> -> vector<1x8x1xf32>
    %72 = vector.broadcast %71 : vector<1x8x1xf32> to vector<1x8x8xf32>
    %73 = arith.mulf %68, %72 : vector<1x8x8xf32>
    %74 = arith.truncf %73 : vector<1x8x8xf32> to vector<1x8x8xbf16>
    %75 = arith.truncf %56 : vector<1x8x8xf32> to vector<1x8x8xbf16>
    "tpu.trace_start"() <{level = 10 : i32, message = "bqm,bmk->bqk"}> : () -> ()
    %cst_47 = arith.constant dense<0.000000e+00> : vector<1x8x8xf32>
    %76 = tpu.matmul %74, %75, %cst_47 {dimension_numbers = #tpu.dot_dimension_numbers<[2], [1], [1], [2], [0, 0, 0, 1, 1, 2], [0], [0]>} : vector<1x8x8xbf16>, vector<1x8x8xbf16>, vector<1x8x8xf32> -> vector<1x8x8xf32>
    "tpu.trace_stop"() : () -> ()
    %77 = arith.truncf %76 : vector<1x8x8xf32> to vector<1x8x8xbf16>
    %c0_48 = arith.constant 0 : index
    %c0_49 = arith.constant 0 : index
    %c0_50 = arith.constant 0 : index
    %c0_51 = arith.constant 0 : index
    %78 = vector.load %arg13[%c0_48, %c0_49, %c0_50, %c0_51] : memref<1x4x8x32xbf16, #tpu.memory_space<vmem>>, vector<1x1x8x32xbf16>
    %79 = vector.shape_cast %78 : vector<1x1x8x32xbf16> to vector<8x32xbf16>
    "tpu.trace_start"() <{level = 10 : i32, message = "blk,kd->bld"}> : () -> ()
    %cst_52 = arith.constant dense<0.000000e+00> : vector<1x8x32xf32>
    %80 = tpu.matmul %77, %79, %cst_52 {dimension_numbers = #tpu.dot_dimension_numbers<[2], [0], [0, 1], [1], [0, 0, 0, 1, 1, 1], [], []>} : vector<1x8x8xbf16>, vector<8x32xbf16>, vector<1x8x32xf32> -> vector<1x8x32xf32>
    "tpu.trace_stop"() : () -> ()
    %81 = arith.addf %32, %80 : vector<1x8x32xf32>
    %c0_53 = arith.constant 0 : index
    %c1 = arith.constant 1 : index
    %c0_54 = arith.constant 0 : index
    %c0_55 = arith.constant 0 : index
    %82 = vector.load %arg7[%c0_53, %c1, %c0_54, %c0_55] : memref<1x4x32x8xbf16, #tpu.memory_space<vmem>>, vector<1x1x32x8xbf16>
    %83 = vector.shape_cast %82 : vector<1x1x32x8xbf16> to vector<32x8xbf16>
    "tpu.trace_start"() <{level = 10 : i32, message = "bld,dk->blk"}> : () -> ()
    %cst_56 = arith.constant dense<0.000000e+00> : vector<1x8x8xf32>
    %84 = tpu.matmul %30, %83, %cst_56 {dimension_numbers = #tpu.dot_dimension_numbers<[2], [0], [0, 1], [1], [0, 0, 0, 1, 1, 1], [], []>} : vector<1x8x32xbf16>, vector<32x8xbf16>, vector<1x8x8xf32> -> vector<1x8x8xf32>
    "tpu.trace_stop"() : () -> ()
    %c0_57 = arith.constant 0 : index
    %c1_58 = arith.constant 1 : index
    %c0_59 = arith.constant 0 : index
    %c0_60 = arith.constant 0 : index
    %85 = vector.load %arg8[%c0_57, %c1_58, %c0_59, %c0_60] : memref<1x4x1x8xf32, #tpu.memory_space<vmem>>, vector<1x1x1x8xf32>
    %86 = vector.shape_cast %85 : vector<1x1x1x8xf32> to vector<1x8xf32>
    %87 = vector.shape_cast %86 : vector<1x8xf32> to vector<1x1x8xf32>
    %88 = vector.broadcast %87 : vector<1x1x8xf32> to vector<1x8x8xf32>
    %89 = arith.addf %84, %88 : vector<1x8x8xf32>
    %c0_61 = arith.constant 0 : index
    %c1_62 = arith.constant 1 : index
    %c0_63 = arith.constant 0 : index
    %c0_64 = arith.constant 0 : index
    %90 = vector.load %arg9[%c0_61, %c1_62, %c0_63, %c0_64] : memref<1x4x32x8xbf16, #tpu.memory_space<vmem>>, vector<1x1x32x8xbf16>
    %91 = vector.shape_cast %90 : vector<1x1x32x8xbf16> to vector<32x8xbf16>
    "tpu.trace_start"() <{level = 10 : i32, message = "bld,dk->blk"}> : () -> ()
    %cst_65 = arith.constant dense<0.000000e+00> : vector<1x8x8xf32>
    %92 = tpu.matmul %30, %91, %cst_65 {dimension_numbers = #tpu.dot_dimension_numbers<[2], [0], [0, 1], [1], [0, 0, 0, 1, 1, 1], [], []>} : vector<1x8x32xbf16>, vector<32x8xbf16>, vector<1x8x8xf32> -> vector<1x8x8xf32>
    "tpu.trace_stop"() : () -> ()
    %c0_66 = arith.constant 0 : index
    %c1_67 = arith.constant 1 : index
    %c0_68 = arith.constant 0 : index
    %c0_69 = arith.constant 0 : index
    %93 = vector.load %arg10[%c0_66, %c1_67, %c0_68, %c0_69] : memref<1x4x1x8xf32, #tpu.memory_space<vmem>>, vector<1x1x1x8xf32>
    %94 = vector.shape_cast %93 : vector<1x1x1x8xf32> to vector<1x8xf32>
    %95 = vector.shape_cast %94 : vector<1x8xf32> to vector<1x1x8xf32>
    %96 = vector.broadcast %95 : vector<1x1x8xf32> to vector<1x8x8xf32>
    %97 = arith.addf %92, %96 : vector<1x8x8xf32>
    %c0_70 = arith.constant 0 : index
    %c1_71 = arith.constant 1 : index
    %c0_72 = arith.constant 0 : index
    %c0_73 = arith.constant 0 : index
    %98 = vector.load %arg11[%c0_70, %c1_71, %c0_72, %c0_73] : memref<1x4x32x8xbf16, #tpu.memory_space<vmem>>, vector<1x1x32x8xbf16>
    %99 = vector.shape_cast %98 : vector<1x1x32x8xbf16> to vector<32x8xbf16>
    "tpu.trace_start"() <{level = 10 : i32, message = "bld,dk->blk"}> : () -> ()
    %cst_74 = arith.constant dense<0.000000e+00> : vector<1x8x8xf32>
    %100 = tpu.matmul %30, %99, %cst_74 {dimension_numbers = #tpu.dot_dimension_numbers<[2], [0], [0, 1], [1], [0, 0, 0, 1, 1, 1], [], []>} : vector<1x8x32xbf16>, vector<32x8xbf16>, vector<1x8x8xf32> -> vector<1x8x8xf32>
    "tpu.trace_stop"() : () -> ()
    %c0_75 = arith.constant 0 : index
    %c1_76 = arith.constant 1 : index
    %c0_77 = arith.constant 0 : index
    %c0_78 = arith.constant 0 : index
    %101 = vector.load %arg12[%c0_75, %c1_76, %c0_77, %c0_78] : memref<1x4x1x8xf32, #tpu.memory_space<vmem>>, vector<1x1x1x8xf32>
    %102 = vector.shape_cast %101 : vector<1x1x1x8xf32> to vector<1x8xf32>
    %103 = vector.shape_cast %102 : vector<1x8xf32> to vector<1x1x8xf32>
    %104 = vector.broadcast %103 : vector<1x1x8xf32> to vector<1x8x8xf32>
    %105 = arith.addf %100, %104 : vector<1x8x8xf32>
    %cst_79 = arith.constant 0.353553385 : f32
    %106 = vector.broadcast %cst_79 : f32 to vector<1x8x8xf32>
    %107 = arith.mulf %89, %106 : vector<1x8x8xf32>
    %108 = arith.truncf %107 : vector<1x8x8xf32> to vector<1x8x8xbf16>
    %109 = arith.truncf %97 : vector<1x8x8xf32> to vector<1x8x8xbf16>
    "tpu.trace_start"() <{level = 10 : i32, message = "bqk,bmk->bqm"}> : () -> ()
    %cst_80 = arith.constant dense<0.000000e+00> : vector<1x8x8xf32>
    %110 = tpu.matmul %108, %109, %cst_80 {dimension_numbers = #tpu.dot_dimension_numbers<[2], [2], [1], [1], [0, 0, 0, 1, 1, 1], [0], [0]>} : vector<1x8x8xbf16>, vector<1x8x8xbf16>, vector<1x8x8xf32> -> vector<1x8x8xf32>
    "tpu.trace_stop"() : () -> ()
    %111 = vector.shape_cast %31 : vector<8x8xf32> to vector<1x8x8xf32>
    %112 = arith.addf %110, %111 : vector<1x8x8xf32>
    %cst_81 = arith.constant dense<0xFF800000> : vector<1x8xf32>
    %113 = vector.multi_reduction <maximumf>, %112, %cst_81 [2] : vector<1x8x8xf32> to vector<1x8xf32>
    %114 = vector.shape_cast %113 : vector<1x8xf32> to vector<1x8x1xf32>
    %115 = vector.broadcast %114 : vector<1x8x1xf32> to vector<1x8x8xf32>
    %116 = arith.subf %112, %115 : vector<1x8x8xf32>
    %117 = math.exp %116 : vector<1x8x8xf32>
    %cst_82 = arith.constant dense<0.000000e+00> : vector<1x8xf32>
    %118 = vector.multi_reduction <add>, %117, %cst_82 [2] : vector<1x8x8xf32> to vector<1x8xf32>
    %119 = vector.shape_cast %118 : vector<1x8xf32> to vector<1x8x1xf32>
    %120 = tpu.reciprocal %119 {approx = true} : vector<1x8x1xf32> -> vector<1x8x1xf32>
    %121 = vector.broadcast %120 : vector<1x8x1xf32> to vector<1x8x8xf32>
    %122 = arith.mulf %117, %121 : vector<1x8x8xf32>
    %123 = arith.truncf %122 : vector<1x8x8xf32> to vector<1x8x8xbf16>
    %124 = arith.truncf %105 : vector<1x8x8xf32> to vector<1x8x8xbf16>
    "tpu.trace_start"() <{level = 10 : i32, message = "bqm,bmk->bqk"}> : () -> ()
    %cst_83 = arith.constant dense<0.000000e+00> : vector<1x8x8xf32>
    %125 = tpu.matmul %123, %124, %cst_83 {dimension_numbers = #tpu.dot_dimension_numbers<[2], [1], [1], [2], [0, 0, 0, 1, 1, 2], [0], [0]>} : vector<1x8x8xbf16>, vector<1x8x8xbf16>, vector<1x8x8xf32> -> vector<1x8x8xf32>
    "tpu.trace_stop"() : () -> ()
    %126 = arith.truncf %125 : vector<1x8x8xf32> to vector<1x8x8xbf16>
    %c0_84 = arith.constant 0 : index
    %c1_85 = arith.constant 1 : index
    %c0_86 = arith.constant 0 : index
    %c0_87 = arith.constant 0 : index
    %127 = vector.load %arg13[%c0_84, %c1_85, %c0_86, %c0_87] : memref<1x4x8x32xbf16, #tpu.memory_space<vmem>>, vector<1x1x8x32xbf16>
    %128 = vector.shape_cast %127 : vector<1x1x8x32xbf16> to vector<8x32xbf16>
    "tpu.trace_start"() <{level = 10 : i32, message = "blk,kd->bld"}> : () -> ()
    %cst_88 = arith.constant dense<0.000000e+00> : vector<1x8x32xf32>
    %129 = tpu.matmul %126, %128, %cst_88 {dimension_numbers = #tpu.dot_dimension_numbers<[2], [0], [0, 1], [1], [0, 0, 0, 1, 1, 1], [], []>} : vector<1x8x8xbf16>, vector<8x32xbf16>, vector<1x8x32xf32> -> vector<1x8x32xf32>
    "tpu.trace_stop"() : () -> ()
    %130 = arith.addf %81, %129 : vector<1x8x32xf32>
    %c0_89 = arith.constant 0 : index
    %c2 = arith.constant 2 : index
    %c0_90 = arith.constant 0 : index
    %c0_91 = arith.constant 0 : index
    %131 = vector.load %arg7[%c0_89, %c2, %c0_90, %c0_91] : memref<1x4x32x8xbf16, #tpu.memory_space<vmem>>, vector<1x1x32x8xbf16>
    %132 = vector.shape_cast %131 : vector<1x1x32x8xbf16> to vector<32x8xbf16>
    "tpu.trace_start"() <{level = 10 : i32, message = "bld,dk->blk"}> : () -> ()
    %cst_92 = arith.constant dense<0.000000e+00> : vector<1x8x8xf32>
    %133 = tpu.matmul %30, %132, %cst_92 {dimension_numbers = #tpu.dot_dimension_numbers<[2], [0], [0, 1], [1], [0, 0, 0, 1, 1, 1], [], []>} : vector<1x8x32xbf16>, vector<32x8xbf16>, vector<1x8x8xf32> -> vector<1x8x8xf32>
    "tpu.trace_stop"() : () -> ()
    %c0_93 = arith.constant 0 : index
    %c2_94 = arith.constant 2 : index
    %c0_95 = arith.constant 0 : index
    %c0_96 = arith.constant 0 : index
    %134 = vector.load %arg8[%c0_93, %c2_94, %c0_95, %c0_96] : memref<1x4x1x8xf32, #tpu.memory_space<vmem>>, vector<1x1x1x8xf32>
    %135 = vector.shape_cast %134 : vector<1x1x1x8xf32> to vector<1x8xf32>
    %136 = vector.shape_cast %135 : vector<1x8xf32> to vector<1x1x8xf32>
    %137 = vector.broadcast %136 : vector<1x1x8xf32> to vector<1x8x8xf32>
    %138 = arith.addf %133, %137 : vector<1x8x8xf32>
    %c0_97 = arith.constant 0 : index
    %c2_98 = arith.constant 2 : index
    %c0_99 = arith.constant 0 : index
    %c0_100 = arith.constant 0 : index
    %139 = vector.load %arg9[%c0_97, %c2_98, %c0_99, %c0_100] : memref<1x4x32x8xbf16, #tpu.memory_space<vmem>>, vector<1x1x32x8xbf16>
    %140 = vector.shape_cast %139 : vector<1x1x32x8xbf16> to vector<32x8xbf16>
    "tpu.trace_start"() <{level = 10 : i32, message = "bld,dk->blk"}> : () -> ()
    %cst_101 = arith.constant dense<0.000000e+00> : vector<1x8x8xf32>
    %141 = tpu.matmul %30, %140, %cst_101 {dimension_numbers = #tpu.dot_dimension_numbers<[2], [0], [0, 1], [1], [0, 0, 0, 1, 1, 1], [], []>} : vector<1x8x32xbf16>, vector<32x8xbf16>, vector<1x8x8xf32> -> vector<1x8x8xf32>
    "tpu.trace_stop"() : () -> ()
    %c0_102 = arith.constant 0 : index
    %c2_103 = arith.constant 2 : index
    %c0_104 = arith.constant 0 : index
    %c0_105 = arith.constant 0 : index
    %142 = vector.load %arg10[%c0_102, %c2_103, %c0_104, %c0_105] : memref<1x4x1x8xf32, #tpu.memory_space<vmem>>, vector<1x1x1x8xf32>
    %143 = vector.shape_cast %142 : vector<1x1x1x8xf32> to vector<1x8xf32>
    %144 = vector.shape_cast %143 : vector<1x8xf32> to vector<1x1x8xf32>
    %145 = vector.broadcast %144 : vector<1x1x8xf32> to vector<1x8x8xf32>
    %146 = arith.addf %141, %145 : vector<1x8x8xf32>
    %c0_106 = arith.constant 0 : index
    %c2_107 = arith.constant 2 : index
    %c0_108 = arith.constant 0 : index
    %c0_109 = arith.constant 0 : index
    %147 = vector.load %arg11[%c0_106, %c2_107, %c0_108, %c0_109] : memref<1x4x32x8xbf16, #tpu.memory_space<vmem>>, vector<1x1x32x8xbf16>
    %148 = vector.shape_cast %147 : vector<1x1x32x8xbf16> to vector<32x8xbf16>
    "tpu.trace_start"() <{level = 10 : i32, message = "bld,dk->blk"}> : () -> ()
    %cst_110 = arith.constant dense<0.000000e+00> : vector<1x8x8xf32>
    %149 = tpu.matmul %30, %148, %cst_110 {dimension_numbers = #tpu.dot_dimension_numbers<[2], [0], [0, 1], [1], [0, 0, 0, 1, 1, 1], [], []>} : vector<1x8x32xbf16>, vector<32x8xbf16>, vector<1x8x8xf32> -> vector<1x8x8xf32>
    "tpu.trace_stop"() : () -> ()
    %c0_111 = arith.constant 0 : index
    %c2_112 = arith.constant 2 : index
    %c0_113 = arith.constant 0 : index
    %c0_114 = arith.constant 0 : index
    %150 = vector.load %arg12[%c0_111, %c2_112, %c0_113, %c0_114] : memref<1x4x1x8xf32, #tpu.memory_space<vmem>>, vector<1x1x1x8xf32>
    %151 = vector.shape_cast %150 : vector<1x1x1x8xf32> to vector<1x8xf32>
    %152 = vector.shape_cast %151 : vector<1x8xf32> to vector<1x1x8xf32>
    %153 = vector.broadcast %152 : vector<1x1x8xf32> to vector<1x8x8xf32>
    %154 = arith.addf %149, %153 : vector<1x8x8xf32>
    %cst_115 = arith.constant 0.353553385 : f32
    %155 = vector.broadcast %cst_115 : f32 to vector<1x8x8xf32>
    %156 = arith.mulf %138, %155 : vector<1x8x8xf32>
    %157 = arith.truncf %156 : vector<1x8x8xf32> to vector<1x8x8xbf16>
    %158 = arith.truncf %146 : vector<1x8x8xf32> to vector<1x8x8xbf16>
    "tpu.trace_start"() <{level = 10 : i32, message = "bqk,bmk->bqm"}> : () -> ()
    %cst_116 = arith.constant dense<0.000000e+00> : vector<1x8x8xf32>
    %159 = tpu.matmul %157, %158, %cst_116 {dimension_numbers = #tpu.dot_dimension_numbers<[2], [2], [1], [1], [0, 0, 0, 1, 1, 1], [0], [0]>} : vector<1x8x8xbf16>, vector<1x8x8xbf16>, vector<1x8x8xf32> -> vector<1x8x8xf32>
    "tpu.trace_stop"() : () -> ()
    %160 = vector.shape_cast %31 : vector<8x8xf32> to vector<1x8x8xf32>
    %161 = arith.addf %159, %160 : vector<1x8x8xf32>
    %cst_117 = arith.constant dense<0xFF800000> : vector<1x8xf32>
    %162 = vector.multi_reduction <maximumf>, %161, %cst_117 [2] : vector<1x8x8xf32> to vector<1x8xf32>
    %163 = vector.shape_cast %162 : vector<1x8xf32> to vector<1x8x1xf32>
    %164 = vector.broadcast %163 : vector<1x8x1xf32> to vector<1x8x8xf32>
    %165 = arith.subf %161, %164 : vector<1x8x8xf32>
    %166 = math.exp %165 : vector<1x8x8xf32>
    %cst_118 = arith.constant dense<0.000000e+00> : vector<1x8xf32>
    %167 = vector.multi_reduction <add>, %166, %cst_118 [2] : vector<1x8x8xf32> to vector<1x8xf32>
    %168 = vector.shape_cast %167 : vector<1x8xf32> to vector<1x8x1xf32>
    %169 = tpu.reciprocal %168 {approx = true} : vector<1x8x1xf32> -> vector<1x8x1xf32>
    %170 = vector.broadcast %169 : vector<1x8x1xf32> to vector<1x8x8xf32>
    %171 = arith.mulf %166, %170 : vector<1x8x8xf32>
    %172 = arith.truncf %171 : vector<1x8x8xf32> to vector<1x8x8xbf16>
    %173 = arith.truncf %154 : vector<1x8x8xf32> to vector<1x8x8xbf16>
    "tpu.trace_start"() <{level = 10 : i32, message = "bqm,bmk->bqk"}> : () -> ()
    %cst_119 = arith.constant dense<0.000000e+00> : vector<1x8x8xf32>
    %174 = tpu.matmul %172, %173, %cst_119 {dimension_numbers = #tpu.dot_dimension_numbers<[2], [1], [1], [2], [0, 0, 0, 1, 1, 2], [0], [0]>} : vector<1x8x8xbf16>, vector<1x8x8xbf16>, vector<1x8x8xf32> -> vector<1x8x8xf32>
    "tpu.trace_stop"() : () -> ()
    %175 = arith.truncf %174 : vector<1x8x8xf32> to vector<1x8x8xbf16>
    %c0_120 = arith.constant 0 : index
    %c2_121 = arith.constant 2 : index
    %c0_122 = arith.constant 0 : index
    %c0_123 = arith.constant 0 : index
    %176 = vector.load %arg13[%c0_120, %c2_121, %c0_122, %c0_123] : memref<1x4x8x32xbf16, #tpu.memory_space<vmem>>, vector<1x1x8x32xbf16>
    %177 = vector.shape_cast %176 : vector<1x1x8x32xbf16> to vector<8x32xbf16>
    "tpu.trace_start"() <{level = 10 : i32, message = "blk,kd->bld"}> : () -> ()
    %cst_124 = arith.constant dense<0.000000e+00> : vector<1x8x32xf32>
    %178 = tpu.matmul %175, %177, %cst_124 {dimension_numbers = #tpu.dot_dimension_numbers<[2], [0], [0, 1], [1], [0, 0, 0, 1, 1, 1], [], []>} : vector<1x8x8xbf16>, vector<8x32xbf16>, vector<1x8x32xf32> -> vector<1x8x32xf32>
    "tpu.trace_stop"() : () -> ()
    %179 = arith.addf %130, %178 : vector<1x8x32xf32>
    %c0_125 = arith.constant 0 : index
    %c3 = arith.constant 3 : index
    %c0_126 = arith.constant 0 : index
    %c0_127 = arith.constant 0 : index
    %180 = vector.load %arg7[%c0_125, %c3, %c0_126, %c0_127] : memref<1x4x32x8xbf16, #tpu.memory_space<vmem>>, vector<1x1x32x8xbf16>
    %181 = vector.shape_cast %180 : vector<1x1x32x8xbf16> to vector<32x8xbf16>
    "tpu.trace_start"() <{level = 10 : i32, message = "bld,dk->blk"}> : () -> ()
    %cst_128 = arith.constant dense<0.000000e+00> : vector<1x8x8xf32>
    %182 = tpu.matmul %30, %181, %cst_128 {dimension_numbers = #tpu.dot_dimension_numbers<[2], [0], [0, 1], [1], [0, 0, 0, 1, 1, 1], [], []>} : vector<1x8x32xbf16>, vector<32x8xbf16>, vector<1x8x8xf32> -> vector<1x8x8xf32>
    "tpu.trace_stop"() : () -> ()
    %c0_129 = arith.constant 0 : index
    %c3_130 = arith.constant 3 : index
    %c0_131 = arith.constant 0 : index
    %c0_132 = arith.constant 0 : index
    %183 = vector.load %arg8[%c0_129, %c3_130, %c0_131, %c0_132] : memref<1x4x1x8xf32, #tpu.memory_space<vmem>>, vector<1x1x1x8xf32>
    %184 = vector.shape_cast %183 : vector<1x1x1x8xf32> to vector<1x8xf32>
    %185 = vector.shape_cast %184 : vector<1x8xf32> to vector<1x1x8xf32>
    %186 = vector.broadcast %185 : vector<1x1x8xf32> to vector<1x8x8xf32>
    %187 = arith.addf %182, %186 : vector<1x8x8xf32>
    %c0_133 = arith.constant 0 : index
    %c3_134 = arith.constant 3 : index
    %c0_135 = arith.constant 0 : index
    %c0_136 = arith.constant 0 : index
    %188 = vector.load %arg9[%c0_133, %c3_134, %c0_135, %c0_136] : memref<1x4x32x8xbf16, #tpu.memory_space<vmem>>, vector<1x1x32x8xbf16>
    %189 = vector.shape_cast %188 : vector<1x1x32x8xbf16> to vector<32x8xbf16>
    "tpu.trace_start"() <{level = 10 : i32, message = "bld,dk->blk"}> : () -> ()
    %cst_137 = arith.constant dense<0.000000e+00> : vector<1x8x8xf32>
    %190 = tpu.matmul %30, %189, %cst_137 {dimension_numbers = #tpu.dot_dimension_numbers<[2], [0], [0, 1], [1], [0, 0, 0, 1, 1, 1], [], []>} : vector<1x8x32xbf16>, vector<32x8xbf16>, vector<1x8x8xf32> -> vector<1x8x8xf32>
    "tpu.trace_stop"() : () -> ()
    %c0_138 = arith.constant 0 : index
    %c3_139 = arith.constant 3 : index
    %c0_140 = arith.constant 0 : index
    %c0_141 = arith.constant 0 : index
    %191 = vector.load %arg10[%c0_138, %c3_139, %c0_140, %c0_141] : memref<1x4x1x8xf32, #tpu.memory_space<vmem>>, vector<1x1x1x8xf32>
    %192 = vector.shape_cast %191 : vector<1x1x1x8xf32> to vector<1x8xf32>
    %193 = vector.shape_cast %192 : vector<1x8xf32> to vector<1x1x8xf32>
    %194 = vector.broadcast %193 : vector<1x1x8xf32> to vector<1x8x8xf32>
    %195 = arith.addf %190, %194 : vector<1x8x8xf32>
    %c0_142 = arith.constant 0 : index
    %c3_143 = arith.constant 3 : index
    %c0_144 = arith.constant 0 : index
    %c0_145 = arith.constant 0 : index
    %196 = vector.load %arg11[%c0_142, %c3_143, %c0_144, %c0_145] : memref<1x4x32x8xbf16, #tpu.memory_space<vmem>>, vector<1x1x32x8xbf16>
    %197 = vector.shape_cast %196 : vector<1x1x32x8xbf16> to vector<32x8xbf16>
    "tpu.trace_start"() <{level = 10 : i32, message = "bld,dk->blk"}> : () -> ()
    %cst_146 = arith.constant dense<0.000000e+00> : vector<1x8x8xf32>
    %198 = tpu.matmul %30, %197, %cst_146 {dimension_numbers = #tpu.dot_dimension_numbers<[2], [0], [0, 1], [1], [0, 0, 0, 1, 1, 1], [], []>} : vector<1x8x32xbf16>, vector<32x8xbf16>, vector<1x8x8xf32> -> vector<1x8x8xf32>
    "tpu.trace_stop"() : () -> ()
    %c0_147 = arith.constant 0 : index
    %c3_148 = arith.constant 3 : index
    %c0_149 = arith.constant 0 : index
    %c0_150 = arith.constant 0 : index
    %199 = vector.load %arg12[%c0_147, %c3_148, %c0_149, %c0_150] : memref<1x4x1x8xf32, #tpu.memory_space<vmem>>, vector<1x1x1x8xf32>
    %200 = vector.shape_cast %199 : vector<1x1x1x8xf32> to vector<1x8xf32>
    %201 = vector.shape_cast %200 : vector<1x8xf32> to vector<1x1x8xf32>
    %202 = vector.broadcast %201 : vector<1x1x8xf32> to vector<1x8x8xf32>
    %203 = arith.addf %198, %202 : vector<1x8x8xf32>
    %cst_151 = arith.constant 0.353553385 : f32
    %204 = vector.broadcast %cst_151 : f32 to vector<1x8x8xf32>
    %205 = arith.mulf %187, %204 : vector<1x8x8xf32>
    %206 = arith.truncf %205 : vector<1x8x8xf32> to vector<1x8x8xbf16>
    %207 = arith.truncf %195 : vector<1x8x8xf32> to vector<1x8x8xbf16>
    "tpu.trace_start"() <{level = 10 : i32, message = "bqk,bmk->bqm"}> : () -> ()
    %cst_152 = arith.constant dense<0.000000e+00> : vector<1x8x8xf32>
    %208 = tpu.matmul %206, %207, %cst_152 {dimension_numbers = #tpu.dot_dimension_numbers<[2], [2], [1], [1], [0, 0, 0, 1, 1, 1], [0], [0]>} : vector<1x8x8xbf16>, vector<1x8x8xbf16>, vector<1x8x8xf32> -> vector<1x8x8xf32>
    "tpu.trace_stop"() : () -> ()
    %209 = vector.shape_cast %31 : vector<8x8xf32> to vector<1x8x8xf32>
    %210 = arith.addf %208, %209 : vector<1x8x8xf32>
    %cst_153 = arith.constant dense<0xFF800000> : vector<1x8xf32>
    %211 = vector.multi_reduction <maximumf>, %210, %cst_153 [2] : vector<1x8x8xf32> to vector<1x8xf32>
    %212 = vector.shape_cast %211 : vector<1x8xf32> to vector<1x8x1xf32>
    %213 = vector.broadcast %212 : vector<1x8x1xf32> to vector<1x8x8xf32>
    %214 = arith.subf %210, %213 : vector<1x8x8xf32>
    %215 = math.exp %214 : vector<1x8x8xf32>
    %cst_154 = arith.constant dense<0.000000e+00> : vector<1x8xf32>
    %216 = vector.multi_reduction <add>, %215, %cst_154 [2] : vector<1x8x8xf32> to vector<1x8xf32>
    %217 = vector.shape_cast %216 : vector<1x8xf32> to vector<1x8x1xf32>
    %218 = tpu.reciprocal %217 {approx = true} : vector<1x8x1xf32> -> vector<1x8x1xf32>
    %219 = vector.broadcast %218 : vector<1x8x1xf32> to vector<1x8x8xf32>
    %220 = arith.mulf %215, %219 : vector<1x8x8xf32>
    %221 = arith.truncf %220 : vector<1x8x8xf32> to vector<1x8x8xbf16>
    %222 = arith.truncf %203 : vector<1x8x8xf32> to vector<1x8x8xbf16>
    "tpu.trace_start"() <{level = 10 : i32, message = "bqm,bmk->bqk"}> : () -> ()
    %cst_155 = arith.constant dense<0.000000e+00> : vector<1x8x8xf32>
    %223 = tpu.matmul %221, %222, %cst_155 {dimension_numbers = #tpu.dot_dimension_numbers<[2], [1], [1], [2], [0, 0, 0, 1, 1, 2], [0], [0]>} : vector<1x8x8xbf16>, vector<1x8x8xbf16>, vector<1x8x8xf32> -> vector<1x8x8xf32>
    "tpu.trace_stop"() : () -> ()
    %224 = arith.truncf %223 : vector<1x8x8xf32> to vector<1x8x8xbf16>
    %c0_156 = arith.constant 0 : index
    %c3_157 = arith.constant 3 : index
    %c0_158 = arith.constant 0 : index
    %c0_159 = arith.constant 0 : index
    %225 = vector.load %arg13[%c0_156, %c3_157, %c0_158, %c0_159] : memref<1x4x8x32xbf16, #tpu.memory_space<vmem>>, vector<1x1x8x32xbf16>
    %226 = vector.shape_cast %225 : vector<1x1x8x32xbf16> to vector<8x32xbf16>
    "tpu.trace_start"() <{level = 10 : i32, message = "blk,kd->bld"}> : () -> ()
    %cst_160 = arith.constant dense<0.000000e+00> : vector<1x8x32xf32>
    %227 = tpu.matmul %224, %226, %cst_160 {dimension_numbers = #tpu.dot_dimension_numbers<[2], [0], [0, 1], [1], [0, 0, 0, 1, 1, 1], [], []>} : vector<1x8x8xbf16>, vector<8x32xbf16>, vector<1x8x32xf32> -> vector<1x8x32xf32>
    "tpu.trace_stop"() : () -> ()
    %228 = arith.addf %179, %227 : vector<1x8x32xf32>
    %229 = arith.addf %3, %228 : vector<1x8x32xf32>
    %c0_161 = arith.constant 0 : index
    %c0_162 = arith.constant 0 : index
    %c0_163 = arith.constant 0 : index
    %230 = vector.load %arg14[%c0_161, %c0_162, %c0_163] : memref<1x1x32xf32, #tpu.memory_space<vmem>>, vector<1x1x32xf32>
    %231 = vector.shape_cast %230 : vector<1x1x32xf32> to vector<1x32xf32>
    %232 = vector.shape_cast %231 : vector<1x32xf32> to vector<1x1x32xf32>
    %233 = vector.broadcast %232 : vector<1x1x32xf32> to vector<1x8x32xf32>
    %234 = arith.addf %229, %233 : vector<1x8x32xf32>
    %c0_164 = arith.constant 0 : index
    %c0_165 = arith.constant 0 : index
    %c0_166 = arith.constant 0 : index
    %235 = vector.load %arg15[%c0_164, %c0_165, %c0_166] : memref<1x1x32xf32, #tpu.memory_space<vmem>>, vector<1x1x32xf32>
    %236 = vector.shape_cast %235 : vector<1x1x32xf32> to vector<1x32xf32>
    %c0_167 = arith.constant 0 : index
    %c0_168 = arith.constant 0 : index
    %c0_169 = arith.constant 0 : index
    %237 = vector.load %arg16[%c0_167, %c0_168, %c0_169] : memref<1x1x32xf32, #tpu.memory_space<vmem>>, vector<1x1x32xf32>
    %238 = vector.shape_cast %237 : vector<1x1x32xf32> to vector<1x32xf32>
    %cst_170 = arith.constant dense<0.000000e+00> : vector<1x8xf32>
    %239 = vector.multi_reduction <add>, %234, %cst_170 [2] : vector<1x8x32xf32> to vector<1x8xf32>
    %240 = vector.shape_cast %239 : vector<1x8xf32> to vector<1x8x1xf32>
    %cst_171 = arith.constant 3.200000e+01 : f32
    %241 = vector.broadcast %cst_171 : f32 to vector<1x8x1xf32>
    %242 = arith.divf %240, %241 : vector<1x8x1xf32>
    %243 = vector.broadcast %242 : vector<1x8x1xf32> to vector<1x8x32xf32>
    %244 = arith.subf %234, %243 : vector<1x8x32xf32>
    %245 = arith.mulf %244, %244 : vector<1x8x32xf32>
    %cst_172 = arith.constant dense<0.000000e+00> : vector<1x8xf32>
    %246 = vector.multi_reduction <add>, %245, %cst_172 [2] : vector<1x8x32xf32> to vector<1x8xf32>
    %247 = vector.shape_cast %246 : vector<1x8xf32> to vector<1x8x1xf32>
    %cst_173 = arith.constant 3.200000e+01 : f32
    %248 = vector.broadcast %cst_173 : f32 to vector<1x8x1xf32>
    %249 = arith.divf %247, %248 : vector<1x8x1xf32>
    %cst_174 = arith.constant 9.99999974E-6 : f32
    %250 = vector.broadcast %cst_174 : f32 to vector<1x8x1xf32>
    %251 = arith.addf %249, %250 : vector<1x8x1xf32>
    %252 = math.rsqrt %251 : vector<1x8x1xf32>
    %253 = vector.broadcast %252 : vector<1x8x1xf32> to vector<1x8x32xf32>
    %254 = arith.mulf %244, %253 : vector<1x8x32xf32>
    %255 = vector.shape_cast %236 : vector<1x32xf32> to vector<1x1x32xf32>
    %256 = vector.broadcast %255 : vector<1x1x32xf32> to vector<1x8x32xf32>
    %257 = arith.mulf %254, %256 : vector<1x8x32xf32>
    %258 = vector.shape_cast %238 : vector<1x32xf32> to vector<1x1x32xf32>
    %259 = vector.broadcast %258 : vector<1x1x32xf32> to vector<1x8x32xf32>
    %260 = arith.addf %257, %259 : vector<1x8x32xf32>
    %261 = arith.truncf %260 : vector<1x8x32xf32> to vector<1x8x32xbf16>
    %c0_175 = arith.constant 0 : index
    %c0_176 = arith.constant 0 : index
    %c0_177 = arith.constant 0 : index
    %262 = vector.load %arg17[%c0_175, %c0_176, %c0_177] : memref<1x32x128xbf16, #tpu.memory_space<vmem>>, vector<1x32x128xbf16>
    %263 = vector.shape_cast %262 : vector<1x32x128xbf16> to vector<32x128xbf16>
    "tpu.trace_start"() <{level = 10 : i32, message = "bld,df->blf"}> : () -> ()
    %cst_178 = arith.constant dense<0.000000e+00> : vector<1x8x128xf32>
    %264 = tpu.matmul %261, %263, %cst_178 {dimension_numbers = #tpu.dot_dimension_numbers<[2], [0], [0, 1], [1], [0, 0, 0, 1, 1, 1], [], []>} : vector<1x8x32xbf16>, vector<32x128xbf16>, vector<1x8x128xf32> -> vector<1x8x128xf32>
    "tpu.trace_stop"() : () -> ()
    %c0_179 = arith.constant 0 : index
    %c0_180 = arith.constant 0 : index
    %c0_181 = arith.constant 0 : index
    %265 = vector.load %arg18[%c0_179, %c0_180, %c0_181] : memref<1x1x128xf32, #tpu.memory_space<vmem>>, vector<1x1x128xf32>
    %266 = vector.shape_cast %265 : vector<1x1x128xf32> to vector<1x128xf32>
    %267 = vector.shape_cast %266 : vector<1x128xf32> to vector<1x1x128xf32>
    %268 = vector.broadcast %267 : vector<1x1x128xf32> to vector<1x8x128xf32>
    %269 = arith.addf %264, %268 : vector<1x8x128xf32>
    %cst_182 = arith.constant 1.702000e+00 : f32
    %270 = vector.broadcast %cst_182 : f32 to vector<1x8x128xf32>
    %271 = arith.mulf %270, %269 : vector<1x8x128xf32>
    %272 = arith.negf %271 : vector<1x8x128xf32>
    %273 = math.exp %272 : vector<1x8x128xf32>
    %cst_183 = arith.constant 1.000000e+00 : f32
    %274 = vector.broadcast %cst_183 : f32 to vector<1x8x128xf32>
    %275 = arith.addf %274, %273 : vector<1x8x128xf32>
    %276 = arith.divf %274, %275 : vector<1x8x128xf32>
    %277 = arith.mulf %269, %276 : vector<1x8x128xf32>
    %278 = arith.truncf %277 : vector<1x8x128xf32> to vector<1x8x128xbf16>
    %c0_184 = arith.constant 0 : index
    %c0_185 = arith.constant 0 : index
    %c0_186 = arith.constant 0 : index
    %279 = vector.load %arg19[%c0_184, %c0_185, %c0_186] : memref<1x128x32xbf16, #tpu.memory_space<vmem>>, vector<1x128x32xbf16>
    %280 = vector.shape_cast %279 : vector<1x128x32xbf16> to vector<128x32xbf16>
    "tpu.trace_start"() <{level = 10 : i32, message = "blf,fd->bld"}> : () -> ()
    %cst_187 = arith.constant dense<0.000000e+00> : vector<1x8x32xf32>
    %281 = tpu.matmul %278, %280, %cst_187 {dimension_numbers = #tpu.dot_dimension_numbers<[2], [0], [0, 1], [1], [0, 0, 0, 1, 1, 1], [], []>} : vector<1x8x128xbf16>, vector<128x32xbf16>, vector<1x8x32xf32> -> vector<1x8x32xf32>
    "tpu.trace_stop"() : () -> ()
    %c0_188 = arith.constant 0 : index
    %c0_189 = arith.constant 0 : index
    %c0_190 = arith.constant 0 : index
    %282 = vector.load %arg20[%c0_188, %c0_189, %c0_190] : memref<1x1x32xf32, #tpu.memory_space<vmem>>, vector<1x1x32xf32>
    %283 = vector.shape_cast %282 : vector<1x1x32xf32> to vector<1x32xf32>
    %284 = vector.shape_cast %283 : vector<1x32xf32> to vector<1x1x32xf32>
    %285 = vector.broadcast %284 : vector<1x1x32xf32> to vector<1x8x32xf32>
    %286 = arith.addf %281, %285 : vector<1x8x32xf32>
    %287 = arith.addf %234, %286 : vector<1x8x32xf32>
    %c0_191 = arith.constant 0 : index
    %c0_192 = arith.constant 0 : index
    %c0_193 = arith.constant 0 : index
    %288 = vector.load %arg25[%c0_191, %c0_192, %c0_193] : memref<1x8x32xf32, #tpu.memory_space<vmem>>, vector<1x8x32xf32>
    tpu.vector_store %arg25[%c0_191, %c0_192, %c0_193], %287 {strides = array<i32>} : memref<1x8x32xf32, #tpu.memory_space<vmem>>, vector<1x8x32xf32>,
    %c1_i32 = arith.constant 1 : i32
    %289 = arith.cmpi eq, %arg1, %c1_i32 : i32
    %290 = arith.extui %289 : i1 to i32
    %c0_i32_194 = arith.constant 0 : i32
    %291 = arith.cmpi ne, %290, %c0_i32_194 : i32
    scf.if %291 {
      %cst_195 = arith.constant 0.000000e+00 : f32
      %292 = vector.broadcast %cst_195 : f32 to vector<8x32xf32>
      %c0_196 = arith.constant 0 : index
      %c0_197 = arith.constant 0 : index
      %293 = vector.load %arg27[%c0_196, %c0_197] : memref<8x32xf32, #tpu.memory_space<vmem>>, vector<8x32xf32>
      tpu.vector_store %arg27[%c0_196, %c0_197], %292 {strides = array<i32>} : memref<8x32xf32, #tpu.memory_space<vmem>>, vector<8x32xf32>,
      %c1_i32_198 = arith.constant 1 : i32
      %294 = arith.muli %arg0, %c1_i32_198 : i32
      %c0_i32_199 = arith.constant 0 : i32
      %295 = arith.addi %294, %c0_i32_199 : i32
      %296 = arith.index_cast %295 : i32 to index
      %297 = memref.load %arg2[%296] : memref<2xi32, #tpu.memory_space<smem>>
      %c0_200 = arith.constant 0 : index
      %298 = arith.index_cast %297 : i32 to index
      %c0_201 = arith.constant 0 : index
      %299 = vector.load %arg25[%c0_200, %298, %c0_201] : memref<1x8x32xf32, #tpu.memory_space<vmem>>, vector<1x1x32xf32>
      %300 = vector.shape_cast %299 : vector<1x1x32xf32> to vector<1x32xf32>
      %c0_202 = arith.constant 0 : index
      %c0_203 = arith.constant 0 : index
      %301 = vector.load %arg27[%c0_202, %c0_203] : memref<8x32xf32, #tpu.memory_space<vmem>>, vector<1x32xf32>
      tpu.vector_store %arg27[%c0_202, %c0_203], %300 {strides = array<i32>} : memref<8x32xf32, #tpu.memory_space<vmem>>, vector<1x32xf32>,
      %c0_204 = arith.constant 0 : index
      %c0_205 = arith.constant 0 : index
      %302 = vector.load %arg27[%c0_204, %c0_205] : memref<8x32xf32, #tpu.memory_space<vmem>>, vector<8x32xf32>
      %c0_206 = arith.constant 0 : index
      %c0_207 = arith.constant 0 : index
      %303 = vector.load %arg21[%c0_206, %c0_207] : memref<1x32xf32, #tpu.memory_space<vmem>>, vector<1x32xf32>
      %c0_208 = arith.constant 0 : index
      %c0_209 = arith.constant 0 : index
      %304 = vector.load %arg22[%c0_208, %c0_209] : memref<1x32xf32, #tpu.memory_space<vmem>>, vector<1x32xf32>
      %cst_210 = arith.constant dense<0.000000e+00> : vector<8xf32>
      %305 = vector.multi_reduction <add>, %302, %cst_210 [1] : vector<8x32xf32> to vector<8xf32>
      %306 = vector.shape_cast %305 : vector<8xf32> to vector<8x1xf32>
      %cst_211 = arith.constant 3.200000e+01 : f32
      %307 = vector.broadcast %cst_211 : f32 to vector<8x1xf32>
      %308 = arith.divf %306, %307 : vector<8x1xf32>
      %309 = vector.broadcast %308 : vector<8x1xf32> to vector<8x32xf32>
      %310 = arith.subf %302, %309 : vector<8x32xf32>
      %311 = arith.mulf %310, %310 : vector<8x32xf32>
      %cst_212 = arith.constant dense<0.000000e+00> : vector<8xf32>
      %312 = vector.multi_reduction <add>, %311, %cst_212 [1] : vector<8x32xf32> to vector<8xf32>
      %313 = vector.shape_cast %312 : vector<8xf32> to vector<8x1xf32>
      %cst_213 = arith.constant 3.200000e+01 : f32
      %314 = vector.broadcast %cst_213 : f32 to vector<8x1xf32>
      %315 = arith.divf %313, %314 : vector<8x1xf32>
      %cst_214 = arith.constant 9.99999974E-6 : f32
      %316 = vector.broadcast %cst_214 : f32 to vector<8x1xf32>
      %317 = arith.addf %315, %316 : vector<8x1xf32>
      %318 = math.rsqrt %317 : vector<8x1xf32>
      %319 = vector.broadcast %318 : vector<8x1xf32> to vector<8x32xf32>
      %320 = arith.mulf %310, %319 : vector<8x32xf32>
      %321 = vector.broadcast %303 : vector<1x32xf32> to vector<8x32xf32>
      %322 = arith.mulf %320, %321 : vector<8x32xf32>
      %323 = vector.broadcast %304 : vector<1x32xf32> to vector<8x32xf32>
      %324 = arith.addf %322, %323 : vector<8x32xf32>
      %325 = arith.truncf %324 : vector<8x32xf32> to vector<8x32xbf16>
      %c0_215 = arith.constant 0 : index
      %c0_216 = arith.constant 0 : index
      %326 = vector.load %arg23[%c0_215, %c0_216] : memref<32x32xbf16, #tpu.memory_space<vmem>>, vector<32x32xbf16>
      %cst_217 = arith.constant dense<0.000000e+00> : vector<8x32xf32>
      %327 = tpu.matmul %325, %326, %cst_217 {dimension_numbers = #tpu.dot_dimension_numbers<[1], [0], [0], [1], [0, 0, 1, 1], [], []>} : vector<8x32xbf16>, vector<32x32xbf16>, vector<8x32xf32> -> vector<8x32xf32>
      %c0_218 = arith.constant 0 : index
      %c0_219 = arith.constant 0 : index
      %c0_220 = arith.constant 0 : index
      %328 = vector.load %arg24[%c0_218, %c0_219, %c0_220] : memref<1x8x32xf32, #tpu.memory_space<vmem>>, vector<1x8x32xf32>
      %329 = vector.shape_cast %328 : vector<1x8x32xf32> to vector<8x32xf32>
      %330 = vector.shape_cast %327 : vector<8x32xf32> to vector<1x8x32xf32>
      tpu.vector_store %arg24[%c0_218, %c0_219, %c0_220], %330 {strides = array<i32>} : memref<1x8x32xf32, #tpu.memory_space<vmem>>, vector<1x8x32xf32>,
    } else {
    }
    return
  }
  func.func @transform_0(%arg0: i32, %arg1: i32, %arg2: memref<2xi32, #tpu.memory_space<smem>>) -> (i32, i32, i32) {
    %c0_i32 = arith.constant 0 : i32
    %c0_i32_0 = arith.constant 0 : i32
    %c0_i32_1 = arith.constant 0 : i32
    return %arg0, %c0_i32, %c0_i32_0 : i32, i32, i32
  }
  func.func @transform_1(%arg0: i32, %arg1: i32, %arg2: memref<2xi32, #tpu.memory_space<smem>>) -> (i32, i32) {
    %c0_i32 = arith.constant 0 : i32
    %c0_i32_0 = arith.constant 0 : i32
    %c0_i32_1 = arith.constant 0 : i32
    return %c0_i32, %c0_i32_0 : i32, i32
  }
  func.func @transform_2(%arg0: i32, %arg1: i32, %arg2: memref<2xi32, #tpu.memory_space<smem>>) -> (i32, i32, i32) {
    %c0_i32 = arith.constant 0 : i32
    %c0_i32_0 = arith.constant 0 : i32
    %c0_i32_1 = arith.constant 0 : i32
    return %arg1, %c0_i32, %c0_i32_0 : i32, i32, i32
  }
  func.func @transform_3(%arg0: i32, %arg1: i32, %arg2: memref<2xi32, #tpu.memory_space<smem>>) -> (i32, i32, i32) {
    %c0_i32 = arith.constant 0 : i32
    %c0_i32_0 = arith.constant 0 : i32
    %c0_i32_1 = arith.constant 0 : i32
    return %arg1, %c0_i32, %c0_i32_0 : i32, i32, i32
  }
  func.func @transform_4(%arg0: i32, %arg1: i32, %arg2: memref<2xi32, #tpu.memory_space<smem>>) -> (i32, i32, i32, i32) {
    %c0_i32 = arith.constant 0 : i32
    %c0_i32_0 = arith.constant 0 : i32
    %c0_i32_1 = arith.constant 0 : i32
    %c0_i32_2 = arith.constant 0 : i32
    return %arg1, %c0_i32, %c0_i32_0, %c0_i32_1 : i32, i32, i32, i32
  }
  func.func @transform_5(%arg0: i32, %arg1: i32, %arg2: memref<2xi32, #tpu.memory_space<smem>>) -> (i32, i32, i32, i32) {
    %c0_i32 = arith.constant 0 : i32
    %c0_i32_0 = arith.constant 0 : i32
    %c0_i32_1 = arith.constant 0 : i32
    %c0_i32_2 = arith.constant 0 : i32
    return %arg1, %c0_i32, %c0_i32_0, %c0_i32_1 : i32, i32, i32, i32
  }
  func.func @transform_6(%arg0: i32, %arg1: i32, %arg2: memref<2xi32, #tpu.memory_space<smem>>) -> (i32, i32, i32, i32) {
    %c0_i32 = arith.constant 0 : i32
    %c0_i32_0 = arith.constant 0 : i32
    %c0_i32_1 = arith.constant 0 : i32
    %c0_i32_2 = arith.constant 0 : i32
    return %arg1, %c0_i32, %c0_i32_0, %c0_i32_1 : i32, i32, i32, i32
  }
  func.func @transform_7(%arg0: i32, %arg1: i32, %arg2: memref<2xi32, #tpu.memory_space<smem>>) -> (i32, i32, i32, i32) {
    %c0_i32 = arith.constant 0 : i32
    %c0_i32_0 = arith.constant 0 : i32
    %c0_i32_1 = arith.constant 0 : i32
    %c0_i32_2 = arith.constant 0 : i32
    return %arg1, %c0_i32, %c0_i32_0, %c0_i32_1 : i32, i32, i32, i32
  }
  func.func @transform_8(%arg0: i32, %arg1: i32, %arg2: memref<2xi32, #tpu.memory_space<smem>>) -> (i32, i32, i32, i32) {
    %c0_i32 = arith.constant 0 : i32
    %c0_i32_0 = arith.constant 0 : i32
    %c0_i32_1 = arith.constant 0 : i32
    %c0_i32_2 = arith.constant 0 : i32
    return %arg1, %c0_i32, %c0_i32_0, %c0_i32_1 : i32, i32, i32, i32
  }
  func.func @transform_9(%arg0: i32, %arg1: i32, %arg2: memref<2xi32, #tpu.memory_space<smem>>) -> (i32, i32, i32, i32) {
    %c0_i32 = arith.constant 0 : i32
    %c0_i32_0 = arith.constant 0 : i32
    %c0_i32_1 = arith.constant 0 : i32
    %c0_i32_2 = arith.constant 0 : i32
    return %arg1, %c0_i32, %c0_i32_0, %c0_i32_1 : i32, i32, i32, i32
  }
  func.func @transform_10(%arg0: i32, %arg1: i32, %arg2: memref<2xi32, #tpu.memory_space<smem>>) -> (i32, i32, i32, i32) {
    %c0_i32 = arith.constant 0 : i32
    %c0_i32_0 = arith.constant 0 : i32
    %c0_i32_1 = arith.constant 0 : i32
    %c0_i32_2 = arith.constant 0 : i32
    return %arg1, %c0_i32, %c0_i32_0, %c0_i32_1 : i32, i32, i32, i32
  }
  func.func @transform_11(%arg0: i32, %arg1: i32, %arg2: memref<2xi32, #tpu.memory_space<smem>>) -> (i32, i32, i32) {
    %c0_i32 = arith.constant 0 : i32
    %c0_i32_0 = arith.constant 0 : i32
    %c0_i32_1 = arith.constant 0 : i32
    return %arg1, %c0_i32, %c0_i32_0 : i32, i32, i32
  }
  func.func @transform_12(%arg0: i32, %arg1: i32, %arg2: memref<2xi32, #tpu.memory_space<smem>>) -> (i32, i32, i32) {
    %c0_i32 = arith.constant 0 : i32
    %c0_i32_0 = arith.constant 0 : i32
    %c0_i32_1 = arith.constant 0 : i32
    return %arg1, %c0_i32, %c0_i32_0 : i32, i32, i32
  }
  func.func @transform_13(%arg0: i32, %arg1: i32, %arg2: memref<2xi32, #tpu.memory_space<smem>>) -> (i32, i32, i32) {
    %c0_i32 = arith.constant 0 : i32
    %c0_i32_0 = arith.constant 0 : i32
    %c0_i32_1 = arith.constant 0 : i32
    return %arg1, %c0_i32, %c0_i32_0 : i32, i32, i32
  }
  func.func @transform_14(%arg0: i32, %arg1: i32, %arg2: memref<2xi32, #tpu.memory_space<smem>>) -> (i32, i32, i32) {
    %c0_i32 = arith.constant 0 : i32
    %c0_i32_0 = arith.constant 0 : i32
    %c0_i32_1 = arith.constant 0 : i32
    return %arg1, %c0_i32, %c0_i32_0 : i32, i32, i32
  }
  func.func @transform_15(%arg0: i32, %arg1: i32, %arg2: memref<2xi32, #tpu.memory_space<smem>>) -> (i32, i32, i32) {
    %c0_i32 = arith.constant 0 : i32
    %c0_i32_0 = arith.constant 0 : i32
    %c0_i32_1 = arith.constant 0 : i32
    return %arg1, %c0_i32, %c0_i32_0 : i32, i32, i32
  }
  func.func @transform_16(%arg0: i32, %arg1: i32, %arg2: memref<2xi32, #tpu.memory_space<smem>>) -> (i32, i32, i32) {
    %c0_i32 = arith.constant 0 : i32
    %c0_i32_0 = arith.constant 0 : i32
    %c0_i32_1 = arith.constant 0 : i32
    return %arg1, %c0_i32, %c0_i32_0 : i32, i32, i32
  }
  func.func @transform_17(%arg0: i32, %arg1: i32, %arg2: memref<2xi32, #tpu.memory_space<smem>>) -> (i32, i32, i32) {
    %c0_i32 = arith.constant 0 : i32
    %c0_i32_0 = arith.constant 0 : i32
    %c0_i32_1 = arith.constant 0 : i32
    return %arg1, %c0_i32, %c0_i32_0 : i32, i32, i32
  }
  func.func @transform_18(%arg0: i32, %arg1: i32, %arg2: memref<2xi32, #tpu.memory_space<smem>>) -> (i32, i32) {
    %c0_i32 = arith.constant 0 : i32
    %c0_i32_0 = arith.constant 0 : i32
    %c0_i32_1 = arith.constant 0 : i32
    return %c0_i32, %c0_i32_0 : i32, i32
  }
  func.func @transform_19(%arg0: i32, %arg1: i32, %arg2: memref<2xi32, #tpu.memory_space<smem>>) -> (i32, i32) {
    %c0_i32 = arith.constant 0 : i32
    %c0_i32_0 = arith.constant 0 : i32
    %c0_i32_1 = arith.constant 0 : i32
    return %c0_i32, %c0_i32_0 : i32, i32
  }
  func.func @transform_20(%arg0: i32, %arg1: i32, %arg2: memref<2xi32, #tpu.memory_space<smem>>) -> (i32, i32) {
    %c0_i32 = arith.constant 0 : i32
    %c0_i32_0 = arith.constant 0 : i32
    %c0_i32_1 = arith.constant 0 : i32
    return %c0_i32, %c0_i32_0 : i32, i32
  }
  func.func @transform_21(%arg0: i32, %arg1: i32, %arg2: memref<2xi32, #tpu.memory_space<smem>>) -> (i32, i32, i32) {
    %c0_i32 = arith.constant 0 : i32
    %c0_i32_0 = arith.constant 0 : i32
    %c0_i32_1 = arith.constant 0 : i32
    return %arg0, %c0_i32, %c0_i32_0 : i32, i32, i32
  }
}

</mosaic_0001>

<bundles_post_ra>
// kernel: text_encoder_forward.1
= control target key start
LH: loop header
LB: loop body
LE: loop exit
PB: predicated region body
PF: predicated region fallthrough
CT: control target
= control target key end

     0   :  { %s2654_s30 = smov [#allocation6]   ;;  %s3118_s0 = inlined_call_operand.vmem [shape: s32[2], index: 0, kind: input, shape index: {}]   ;;  %s3119_s1 = inlined_call_operand.vmem [shape: f32[2,8,32], index: 1, kind: input, shape index: {}]   ;;  %s3120_s2 = inlined_call_operand.vmem [shape: f32[8,32], index: 2, kind: input, shape index: {}]   ;;  %s3121_s3 = inlined_call_operand.vmem [shape: f32[2,1,32], index: 3, kind: input, shape index: {}]   ;;  %s3122_s4 = inlined_call_operand.vmem [shape: f32[2,1,32], index: 4, kind: input, shape index: {}]   ;;  %s3123_s5 = inlined_call_operand.vmem [shape: bf16[2,4,32,8], index: 5, kind: input, shape index: {}]   ;;  %s3124_s6 = inlined_call_operand.vmem [shape: f32[2,4,1,8], index: 6, kind: input, shape index: {}]   ;;  %s3125_s7 = inlined_call_operand.vmem [shape: bf16[2,4,32,8], index: 7, kind: input, shape index: {}]   ;;  %s3126_s8 = inlined_call_operand.vmem [shape: f32[2,4,1,8], index: 8, kind: input, shape index: {}]   ;;  %s3127_s9 = inlined_call_operand.vmem [shape: bf16[2,4,32,8], index: 9, kind: input, shape index: {}]   ;;  %s3128_s10 = inlined_call_operand.vmem [shape: f32[2,4,1,8], index: 10, kind: input, shape index: {}]   ;;  %s3129_s11 = inlined_call_operand.vmem [shape: bf16[2,4,8,32], index: 11, kind: input, shape index: {}]   ;;  %s3130_s12 = inlined_call_operand.vmem [shape: f32[2,1,32], index: 12, kind: input, shape index: {}]   ;;  %s3131_s13 = inlined_call_operand.vmem [shape: f32[2,1,32], index: 13, kind: input, shape index: {}]   ;;  %s3132_s14 = inlined_call_operand.vmem [shape: f32[2,1,32], index: 14, kind: input, shape index: {}]   ;;  %s3133_s15 = inlined_call_operand.vmem [shape: bf16[2,32,128], index: 15, kind: input, shape index: {}]   ;;  %s3134_s16 = inlined_call_operand.vmem [shape: f32[2,1,128], index: 16, kind: input, shape index: {}]   ;;  %s3135_s17 = inlined_call_operand.vmem [shape: bf16[2,128,32], index: 17, kind: input, shape index: {}]   ;;  %s3136_s18 = inlined_call_operand.vmem [shape: f32[2,1,32], index: 18, kind: input, shape index: {}]   ;;  %s3137_s19 = inlined_call_operand.vmem [shape: f32[1,32], index: 19, kind: input, shape index: {}]   ;;  %s3138_s20 = inlined_call_operand.vmem [shape: f32[1,32], index: 20, kind: input, shape index: {}]   ;;  %s3139_s21 = inlined_call_operand.vmem [shape: bf16[32,32], index: 21, kind: input, shape index: {}]   ;;  %s3140_s22 = inlined_call_operand.vmem [shape: f32[2,8,32], index: 22, kind: output, shape index: {}]  }
   0x1   :  { %3150 = sst [smem:[#allocation18_spill]] %s3118_s0 }
   0x2   :  { %3151 = sst [smem:[#allocation19_spill]] %s3119_s1 }
   0x3   :  { %3152 = sst [smem:[#allocation20_spill]] %s3120_s2 }
   0x4   :  { %3153 = sst [smem:[#allocation21_spill]] %s3121_s3 }
   0x5   :  { %3154 = sst [smem:[#allocation22_spill]] %s3122_s4 }
   0x6   :  { %3155 = sst [smem:[#allocation23_spill]] %s3123_s5 }
   0x7   :  { %3156 = sst [smem:[#allocation24_spill]] %s3124_s6 }
   0x8   :  { %3157 = sst [smem:[#allocation25_spill]] %s3125_s7 }
   0x9   :  { %3158 = sst [smem:[#allocation26_spill]] %s3126_s8 }
   0xa   :  { %3159 = sst [smem:[#allocation27_spill]] %s3127_s9 }
   0xb   :  { %3160 = sst [smem:[#allocation28_spill]] %s3128_s10 }
   0xc   :  { %3161 = sst [smem:[#allocation29_spill]] %s3129_s11 }
   0xd   :  { %3162 = sst [smem:[#allocation30_spill]] %s3132_s14 }
   0xe   :  { %3163 = sst [smem:[#allocation31_spill]] %s3134_s16 }
   0xf   :  { %3164 = sst [smem:[#allocation32_spill]] %s3136_s18 }
  0x10   :  { %3165 = sst [smem:[#allocation33_spill]] %s3137_s19 }
  0x11   :  { %3166 = sst [smem:[#allocation34_spill]] %s3138_s20 }
  0x12   :  { %3167 = sst [smem:[#allocation35_spill]] %s3139_s21 }
  0x13   :  { %3168 = sst [smem:[#allocation36_spill]] %s3140_s22 }
  0x14   :  { %s3169_s29 = sld [smem:[#allocation18_spill]] }
  0x1a   :  { %s28_s16 = sshll.u32 %s3169_s29, 4  ;;  %s29_s16 = int_to_ptr.vmem [resolvable:$true] %s28_s16 }
  0x1b   :  { %31 = dma.vmem_to_smem %s29_s16, 16, %s2654_s30, [#allocation5] }
  0x1c   :  { %2632 = dma.done.wait [#allocation5], 16 }
  0x1d   :  { %2633 = vsyncadd [#allocation5], 4294967280 }
  0x1e   :  { %34 = sfence }
  0x1f   :  { %s2776_s4 = smov 0   ;;  %s2778_s0 = smov 0  }
  0x20   :  { %s2780_s23 = smov 0   ;;  %s2782_s1 = smov 0  }
  0x21   :  { %s2784_s5 = smov 0  }
  0x22 LB: > { %3170 = sst [smem:[#allocation8_spill]] %s2636_s4  ;;  %s49_s16 = sadd.s32 1, %s2644_s23  ;;  %s2652_s5 = sphi %s2784_s5, %s40_s5   ;;  %s2648_s1 = sphi %s2782_s1, %s3218_s1   ;;  %s2644_s23 = sphi %s2780_s23, %s3217_s23   ;;  %s2640_s0 = sphi %s2778_s0, %s3216_s0   ;;  %s2636_s4 = sphi %s2776_s4, %s3215_s4  }
  0x23   : > { %3171 = sst [smem:[#allocation9_spill]] %s2640_s0  ;;  %s52_s24 = sadd.s32 1, %s2648_s1 }
  0x24   : > { %3172 = sst [smem:[#allocation10_spill]] %s2644_s23  ;;  %p50_p0 = scmp.ge.s32.totalorder %s49_s16, 2 }
  0x25   : > { %3173 = sst [smem:[#allocation11_spill]] %s2648_s1  ;;  %p2224_p1 = scmp.ge.s32.totalorder %s2652_s5, 1 }
  0x26   : > { %3174 = sst [smem:[#allocation12_spill]] %s2652_s5  ;;  %p750_p2 = scmp.lt.s32.totalorder %s2652_s5, 5 }
  0x27   : > { %s3220_s16 = smov (%p50_p0, %s49_s16), 0  ;;  %s3222_s24 = smov (!%p50_p0, %s52_s24), %s2648_s1 }
  0x28   : > { %3175 = sst [smem:[#allocation13_spill]] %s3220_s16  ;;  %p751_p3 = pnand %p2224_p1, %p750_p2 }
  0x29   : > { %p54_p4 = scmp.ge.s32.totalorder %s3222_s24, 2 }
  0x2a   : > { %754 = sbr.rel (%p751_p3) target bundleno = 3622 (0xe26), region = 104 }
  0x2b   : > { %s3224_s24 = smov (%p54_p4, %s3222_s24), 0 }
  0x2c   : > { %3176 = sst [smem:[#allocation14_spill]] %s3224_s24 }
  0x2f   : > { %p871_p5 = scmp.lt.s32.totalorder %s2640_s0, 1  ;;  %p875_p6 = scmp.lt.s32.totalorder %s2636_s4, 1 }
  0x30   : > { %s3177_s3 = sld [smem:[#allocation19_spill]] }
  0x31   : > { %s872_s6 = scalar_select %p871_p5, %s2640_s0, 1 }
  0x32   : > { %s2814_s25 = scalar_select %p875_p6, %s2636_s4, 1 }
  0x33   : > { %s2225_s26 = sshll.u32 %s872_s6, 3  ;;  %s3180_s4 = sld [smem:[#allocation23_spill]] }
  0x34   : > { %s2465_s19 = sshll.u32 %s2814_s25, 6  ;;  %s2228_s22 = sshll.u32 %s2814_s25, 2 }
  0x35   : > { %s3183_s7 = sld [smem:[#allocation25_spill]]  ;;  %s2468_s27 = sshll.u32 %s2814_s25, 4 }
  0x36   : > { %s874_s28 = scalar_lea.vmem %s3177_s3, %s2225_s26  ;;  %s3181_s3 = sld [smem:[#allocation24_spill]] }
  0x37   : > { %s3184_s8 = sld [smem:[#allocation26_spill]]  ;;  %s2889_s23 = scalar_lea.vmem %s3135_s17, %s2465_s19 }
  0x38   : > { %s3185_s9 = sld [smem:[#allocation27_spill]] }
  0x39   : > { %s2831_s6 = scalar_lea.vmem %s3180_s4, %s2465_s19  ;;  %s3186_s10 = sld [smem:[#allocation28_spill]] }
  0x3a   : > { %s3188_s11 = sld [smem:[#allocation29_spill]] }
  0x3b   : > { %s2842_s30 = scalar_lea.vmem %s3183_s7, %s2465_s19  ;;  %s3192_s21 = sld [smem:[#allocation32_spill]] }
  0x3c   : > { %s2837_s18 = scalar_lea.vmem %s3181_s3, %s2228_s22  ;;  %s3193_s20 = sld [smem:[#allocation36_spill]] }
  0x3d   : > { %3182 = sst [smem:[#allocation15_spill]] %s2837_s18  ;;  %s2847_s5 = scalar_lea.vmem %s3184_s8, %s2228_s22 }
  0x3e   : > { %s2852_s4 = scalar_lea.vmem %s3185_s9, %s2465_s19 }
  0x3f   : > { %s2857_s2 = scalar_lea.vmem %s3186_s10, %s2228_s22  ;;  %s2880_s10 = scalar_lea.vmem %s3133_s15, %s2468_s27 }
  0x40   : > { %3187 = sst [smem:[#allocation16_spill]] %s2857_s2  ;;  %s2863_s24 = scalar_lea.vmem %s3188_s11, %s2468_s27 }
  0x41   : > { %3189 = sst [smem:[#allocation17_spill]] %s2863_s24  ;;  %s937_s1 = scalar_lea.vmem %s3192_s21, %s2814_s25 }
  0x42   : > { %s3191_s11 = sld [smem:[#allocation31_spill]]  ;;  %s2898_s14 = scalar_lea.vmem %s3193_s20, %s2225_s26 }
  0x43   : > { %s3194_s27 = sld [smem:[#allocation8_spill]] }
  0x48   : > { %s929_s24 = scalar_lea.vmem %s3191_s11, %s2814_s25 }
  0x49   : > { %p2242_p7 = scmp.ne.s32.totalorder %s3194_s27, 0 }
  0x4a   : > { %s3195_s16 = sld [smem:[#allocation20_spill]] (!%p2242_p7) }
  0x4b   : > { %946 = sbr.rel (%p2242_p7) target bundleno = 87 (0x57), region = 108 }
  0x50   : > { %v947_v0 = vld [vmem:[%s874_s28] sm:$0xff]  ;;  %vm950_vm0 = vcmask 261120   ;;  %v952_v2 = vlaneseq  ;;  %vm958_vm1 = vcmask 64512   ;;  %v2655_v6 = vmov -1e+30  }
  0x51   : > { %v948_v1 = vld [vmem:[%s3195_s16] sm:$0xff] }
  0x52   : > { %v949_v3 = vadd.f32 %v948_v1, %v947_v0  ;;  %v953_v4 = vshrl.u32 %v952_v2, 7  ;;  %v955_v5 = vand.u32 127, %v952_v2 }
  0x54   : > { %951 = vst.msk [vmem:[#allocation2] sm:$0xff] %vm950_vm0, %v949_v3  ;;  %vm956_vm2 = vcmp.le.s32.totalorder %v955_v5, %v953_v4 }
  0x55   : > { %v957_v7 = vsel %vm956_vm2, 0.0, %v2655_v6 }
  0x56   : > { %959 = vst.msk [vmem:[#allocation3] sm:$0xff] %vm958_vm1, %v957_v7 }
  0x57 PF: > { %vm963_vm3 = vcmask 261120   ;;  %v2656_v10 = vmov 32.0   ;;  %v2472_v22 = vld [vmem:[%s2831_s6 + $0x8] sm:$0xff]  ;;  %v2478_v24 = vld [vmem:[%s2831_s6 + $0x18] sm:$0xff]  ;;  %v2471_v25 = vld [vmem:[%s2831_s6] sm:$0xff]  ;;  %s3196_s28 = sld [smem:[#allocation21_spill]]  ;;  %s3204_s9 = scalar_lea.vmem %s3131_s13, %s2814_s25 }
  0x58   : > { %2570 = vrcp.f32 %v2656_v10  ;;  %v2474_v23 = vld [vmem:[%s2842_s30 + $0x8] sm:$0xff]  ;;  %1032 = vmatpush.bf16.msra.mxu0 %v2472_v22  ;;  %1191 = vmatpush.bf16.msra.mxu1 %v2478_v24  ;;  %v2473_v26 = vld [vmem:[%s2842_s30] sm:$0xff]  ;;  %v2477_v27 = vld [vmem:[%s2831_s6 + $0x10] sm:$0xff]  ;;  %s3198_s3 = sld [smem:[#allocation22_spill]]  ;;  %vm1108_vm8 = vcmask 64512   ;;  %vm1144_vm9 = vcmask 1043456  }
  0x59   : > { %1065 = vmatpush.bf16.msra.mxu2 %v2474_v23  ;;  %v2476_v29 = vld [vmem:[%s2852_s4 + $0x8] sm:$0xff]  ;;  %v2475_v31 = vld [vmem:[%s2852_s4] sm:$0xff]  ;;  %s3200_s7 = sld [smem:[#allocation15_spill]]  ;;  %v2480_v45 = vld [vmem:[%s2842_s30 + $0x18] sm:$0xff] }
  0x5a   : > { %v2479_v47 = vld [vmem:[%s2842_s30 + $0x10] sm:$0xff]  ;;  %v2555_v50 = vld [vmem:[%s2847_s5] ss:$0 sm:$0xff]  ;;  %s3201_s8 = sld [smem:[#allocation16_spill]]  ;;  %v2482_v58 = vld [vmem:[%s2852_s4 + $0x18] sm:$0xff] }
  0x5b   : > { %v2904_v8 = vld [vmem:[#allocation2] sm:$0xff]  ;;  %v2481_v61 = vld [vmem:[%s2852_s4 + $0x10] sm:$0xff]  ;;  %s3202_s18 = sld [smem:[#allocation17_spill]] }
  0x5c   : > { %v964_v9 = vsel %vm963_vm3, %v2904_v8, 0.0  ;;  %1033 = vmatpush.bf16.msra.mxu0 %v2471_v25  ;;  %1192 = vmatpush.bf16.msra.mxu1 %v2477_v27  ;;  %v2557_v6 = vld [vmem:[%s2847_s5 + $0x1] ss:$0 sm:$0xff]  ;;  %s3205_s22 = sld [smem:[#allocation30_spill]] }
  0x5d   : > { %965 = vadd.xlane.f32.xlu0 %v964_v9  ;;  %1066 = vmatpush.bf16.msra.mxu2 %v2473_v26  ;;  %s3197_s2 = scalar_lea.vmem %s3196_s28, %s2814_s25 }
  0x5e   : > { %v2571_v11 = vpop.eup %2570  ;;  %v2551_v39 = vld [vmem:[%s3197_s2] ss:$0 sm:$0xff]  ;;  %s3199_s29 = scalar_lea.vmem %s3198_s3, %s2814_s25  ;;  %s3209_s2 = sld [smem:[#allocation8_spill]] }
  0x5f   : > { %v968_v12 = vmul.f32 32.0, %v2571_v11  ;;  %vm972_vm4 = vweird.f32 %v2571_v11  ;;  %v2552_v41 = vld [vmem:[%s3199_s29] ss:$0 sm:$0xff] }
  0x60   : > { %v2553_v51 = vld [vmem:[%s3200_s7] ss:$0 sm:$0xff] }
  0x61   : > { %v969_v13 = vsub.f32 1.0, %v968_v12  ;;  %1098 = vmatpush.bf16.msrb.mxu2 %v2476_v29  ;;  %v2556_v0 = vld [vmem:[%s3201_s8] ss:$0 sm:$0xff] }
  0x62   : > { %s3206_s11 = scalar_lea.vmem %s3205_s22, %s2814_s25 }
  0x63   : > { %v970_v14 = vmul.f32 %v2571_v11, %v969_v13  ;;  %v2960_v13 = vld [vmem:[#allocation3] sm:$0xff] }
  0x64   : > { %p2453_p8 = scmp.ne.s32.totalorder %s3209_s2, 1 }
  0x65   : > { %v971_v15 = vadd.f32 %v2571_v11, %v970_v14  ;;  %1099 = vmatpush.bf16.msrb.mxu2 %v2475_v31  ;;  %s3210_s21 = sld [smem:[#allocation9_spill]] (!%p2453_p8) }
  0x66   : > { %s3211_s29 = sld [smem:[#allocation35_spill]] (!%p2453_p8) }
  0x67   : > { %v2908_v16 = vsel %vm972_vm4, %v2571_v11, %v971_v15 }
  0x6b   : > { %s1912_s20 = sld [smem:[#allocation6 + %s3210_s21]] (!%p2453_p8) }
  0x71   : > { %s1913_s3 = scalar_lea.vmem (!%p2453_p8), [#allocation2], %s1912_s20 }
  0xd0   : > { %v966_v17 = vpop.xlane.xlu0 %965 }
  0xd1   : > { %v974_v18 = vmul.f32 %v2908_v16, %v966_v17 }
  0xd3   : > { %v975_v19 = vsub.f32 %v2904_v8, %v974_v18 }
  0xd5   : > { %v976_v20 = vmul.f32 %v975_v19, %v975_v19 }
  0xd7   : > { %v977_v21 = vsel %vm963_vm3, %v976_v20, 0.0 }
  0xd8   : > { %978 = vadd.xlane.f32.xlu0 %v977_v21 }
 0x14b   : > { %v979_v28 = vpop.xlane.xlu0 %978 }
 0x14c   : > { %v980_v30 = vmul.f32 %v979_v28, %v2908_v16 }
 0x14e   : > { %v981_v32 = vadd.f32 1e-05, %v980_v30 }
 0x150   : > { %2572 = vrsqrt.f32 %v981_v32  ;;  %vm988_vm6 = vweird.f32 %v981_v32 }
 0x156   : > { %v2573_v33 = vpop.eup %2572 }
 0x157   : > { %v983_v34 = vmul.f32 %v2573_v33, %v981_v32  ;;  %vm989_vm5 = vweird.f32 %v2573_v33 }
 0x158   : > { %vm990_vm7 = vmor %vm988_vm6, %vm989_vm5 }
 0x159   : > { %v984_v35 = vmul.f32 %v2573_v33, %v983_v34 }
 0x15b   : > { %v985_v36 = vmul.f32 0.5, %v984_v35  ;;  %v2483_v35 = vld [vmem:[%s2831_s6 + $0x20] sm:$0xff] }
 0x15d   : > { %v986_v37 = vsub.f32 1.5, %v985_v36  ;;  %v2554_v36 = vld [vmem:[%s3200_s7 + $0x1] ss:$0 sm:$0xff] }
 0x15f   : > { %v987_v38 = vmul.f32 %v2573_v33, %v986_v37 }
 0x161   : > { %v991_v40 = vsel %vm990_vm7, %v2573_v33, %v987_v38  ;;  %v2484_v33 = vld [vmem:[%s2831_s6 + $0x28] sm:$0xff] }
 0x162   : > { %v992_v42 = vmul.f32 %v991_v40, %v975_v19  ;;  %v2558_v19 = vld [vmem:[%s3201_s8 + $0x1] ss:$0 sm:$0xff] }
 0x163   : > { %v1162_v40 = vld [vmem:[%s3202_s18] sm:$0xf] }
 0x164   : > { %v996_v43 = vmul.f32 %v2551_v39, %v992_v42 }
 0x166   : > { %v1000_v44 = vadd.f32 %v2552_v41, %v996_v43  ;;  %v1348_v41 = vsel %vm1144_vm9, %v1162_v40, 0  ;;  %v2563_v40 = vld [vmem:[%s2847_s5 + $0x3] ss:$0 sm:$0xff] }
 0x168   : > { %v2933_v46 = vpack.c.bf16 %v1000_v44, %v1000_v44 }
 0x16a   : > { %2251 = vmatmul.msk.bf16.vlgmr.msra.gmra.mxu0 %vm963_vm3, %v2933_v46  ;;  %2260 = vmatmul.msk.bf16.vlgmr.msra.gmra.mxu2 %vm963_vm3, %v2933_v46 }
 0x16b   : > { %2285 = vmatmul.msk.bf16.vlgmr.msra.gmra.mxu1 %vm963_vm3, %v2933_v46  ;;  %1226 = vmatpush.bf16.msra.mxu2 %v2480_v45 }
 0x16f   : > { %1227 = vmatpush.bf16.msra.mxu2 %v2479_v47 }
 0x17a   : > { %2269 = vmatmul.msk.bf16.vlgmr.msrb.gmra.mxu2 %vm963_vm3, %v2933_v46 }
 0x18a   : > { %2299 = vmatmul.msk.bf16.vlgmr.msra.gmra.mxu2 %vm963_vm3, %v2933_v46 }
 0x1e7   : > { %v1035_v48 = vpop.f32.mrf.mxu0 }
 0x1e8   : > { %v2946_v49 = vpop.f32.mrf.mxu1  ;;  %v1036_v55 = vadd.f32 %v2553_v51, %v1035_v48 }
 0x1e9   : > { %v1195_v37 = vadd.f32 %v2554_v36, %v2946_v49 }
 0x1ea   : > { %v1105_v60 = vmul.f32 0.35355338, %v1036_v55 }
 0x1eb   : > { %v1268_v38 = vmul.f32 0.35355338, %v1195_v37 }
 0x1ec   : > { %v1106_v63 = vpack.c.bf16 %v1105_v60, %v1105_v60  ;;  %v2485_v60 = vld [vmem:[%s2842_s30 + $0x20] sm:$0xff] }
 0x1ed   : > { %v1068_v52 = vpop.f32.mrf.mxu2  ;;  %v1269_v39 = vpack.c.bf16 %v1268_v38, %v1268_v38 }
 0x1ee   : > { %v1069_v53 = vadd.f32 %v2555_v50, %v1068_v52 }
 0x1ef   : > { %v1037_v54 = vpop.f32.mrf.mxu0 }
 0x1f0   : > { %v1107_v56 = vpack.c.bf16 %v1069_v53, %v1069_v53  ;;  %v1196_v57 = vpop.f32.mrf.mxu1 }
 0x1f2   : > { %v1113_v59 = vsel %vm1108_vm8, %v1107_v56, 0 }
 0x1f3   : > { %1122 = vmatpush.bf16.xpose.msra.mxu3 %v1113_v59  ;;  %v2486_v59 = vld [vmem:[%s2842_s30 + $0x28] sm:$0xff] }
 0x1f5   : > { %v1070_v62 = vpop.f32.mrf.mxu2 }
 0x1fa   : > { %2270 = vmatmul.msk.bf16.vlgmr.msra.gmra.mxu3 %vm1108_vm8, %v1106_v63 }
 0x1fb   : > { %1261 = vmatpush.bf16.msrb.mxu3 %v2482_v58 }
 0x1fd   : > { %v1101_v1 = vpop.f32.mrf.mxu2 }
 0x1fe   : > { %v1102_v2 = vadd.f32 %v2556_v0, %v1101_v1  ;;  %v2316_v1 = vld [vmem:[%s3202_s18 + $0x4] sm:$0xf] }
 0x1ff   : > { %1262 = vmatpush.bf16.msrb.mxu3 %v2481_v61 }
 0x200   : > { %v1140_v3 = vpack.c.bf16 %v1102_v2, %v1102_v2  ;;  %v1329_v2 = vsel %vm1144_vm9, %v2316_v1, 0 }
 0x201   : > { %1338 = vmatpush.bf16.msrb.mxu2 %v1329_v2  ;;  %v2564_v2 = vld [vmem:[%s3201_s8 + $0x3] ss:$0 sm:$0xff] }
 0x202   : > { %v1146_v4 = vsel %vm1144_vm9, %v1140_v3, 0  ;;  %v2488_v3 = vld [vmem:[%s2852_s4 + $0x28] sm:$0xff] }
 0x203   : > { %1155 = vmatpush.bf16.msrb.mxu0 %v1146_v4  ;;  %1357 = vmatpush.bf16.msra.mxu3 %v1348_v41  ;;  %v2487_v4 = vld [vmem:[%s2852_s4 + $0x20] sm:$0xff] }
 0x205   : > { %v1103_v5 = vpop.f32.mrf.mxu2  ;;  %1461 = vmatpush.bf16.msra.mxu2 %v2488_v3 }
 0x209   : > { %1462 = vmatpush.bf16.msra.mxu2 %v2487_v4 }
 0x20a   : > { %2313 = vmatmul.msk.bf16.vlgmr.msrb.gmra.mxu3 %vm963_vm3, %v2933_v46 }
 0x20d   : > { %v1229_v7 = vpop.f32.mrf.mxu2 }
 0x20e   : > { %v1230_v9 = vadd.f32 %v2557_v6, %v1229_v7  ;;  %v2490_v6 = vld [vmem:[%s2831_s6 + $0x38] sm:$0xff] }
 0x210   : > { %v1270_v10 = vpack.c.bf16 %v1230_v9, %v1230_v9  ;;  %v2489_v9 = vld [vmem:[%s2831_s6 + $0x30] sm:$0xff] }
 0x212   : > { %v1275_v11 = vsel %vm1108_vm8, %v1270_v10, 0 }
 0x213   : > { %1284 = vmatpush.bf16.xpose.msra.mxu0 %v1275_v11  ;;  %v2560_v11 = vld [vmem:[%s2847_s5 + $0x2] ss:$0 sm:$0xff]  ;;  %s3203_s5 = scalar_lea.vmem %s3130_s12, %s2814_s25 }
 0x215   : > { %v1231_v12 = vpop.f32.mrf.mxu2 }
 0x216   : > { %v2559_v12 = vld [vmem:[%s3200_s7 + $0x2] ss:$0 sm:$0xff] }
 0x27d   : > { %v1124_v14 = vpop.f32.mrf.mxu3 }
 0x27e   : > { %v1125_v15 = vadd.f32 %v1124_v14, %v2960_v13 }
 0x280   : > { %v1128_v17 = vsel %vm1108_vm8, %v1125_v15, -inf }
 0x281   : > { %1129 = vmax.xlane.f32.xlu1 %v1128_v17 }
 0x285   : > { %v1126_v18 = vpop.f32.mrf.mxu3 }
 0x28d   : > { %v1264_v20 = vpop.f32.mrf.mxu3 }
 0x28e   : > { %v1265_v21 = vadd.f32 %v2558_v19, %v1264_v20  ;;  %v2492_v19 = vld [vmem:[%s2842_s30 + $0x38] sm:$0xff] }
 0x290   : > { %v1302_v22 = vpack.c.bf16 %v1265_v21, %v1265_v21 }
 0x292   : > { %v1307_v23 = vsel %vm1144_vm9, %v1302_v22, 0  ;;  %v2491_v22 = vld [vmem:[%s2842_s30 + $0x30] sm:$0xff]  ;;  %s3212_s30 = sld [smem:[#allocation33_spill]] (!%p2453_p8) }
 0x293   : > { %1316 = vmatpush.bf16.msrb.mxu1 %v1307_v23 }
 0x295   : > { %v1266_v24 = vpop.f32.mrf.mxu3 }
 0x297   : > { %1426 = vmatpush.bf16.msra.mxu1 %v2486_v59 }
 0x29b   : > { %1427 = vmatpush.bf16.msra.mxu1 %v2485_v60 }
 0x2f4   : > { %v1130_v25 = vpop.xlane.xlu1 %1129 }
 0x2f5   : > { %v1131_v26 = vsub.f32 %v1125_v15, %v1130_v25 }
 0x2f7   : > { %v1132_v27 = vmul.f32 1.442695, %v1131_v26 }
 0x2f9   : > { %2574 = vpow2.f32 %v1132_v27  ;;  %v2561_v27 = vld [vmem:[%s3201_s8 + $0x2] ss:$0 sm:$0xff] }
 0x2ff   : > { %v2575_v28 = vpop.eup %2574 }
 0x300   : > { %v1134_v29 = vsel %vm1108_vm8, %v2575_v28, 0.0 }
 0x301   : > { %1135 = vadd.xlane.f32.xlu1 %v1134_v29 }
 0x374   : > { %v1136_v30 = vpop.xlane.xlu1 %1135 }
 0x375   : > { %2576 = vrcp.f32 %v1136_v30 }
 0x37b   : > { %v2577_v31 = vpop.eup %2576 }
 0x37c   : > { %v1138_v32 = vmul.f32 %v2577_v31, %v2575_v28  ;;  %v2363_v28 = vld [vmem:[%s3202_s18 + $0x8] sm:$0xf] }
 0x37d   : > { %v1529_v29 = vsel %vm1144_vm9, %v2363_v28, 0 }
 0x37e   : > { %v1139_v34 = vpack.c.bf16 %v1138_v32, %v1138_v32 }
 0x380   : > { %2271 = vmatmul.msk.bf16.vlgmr.msrb.gmra.mxu0 %vm1108_vm8, %v1139_v34 }
 0x381   : > { %1391 = vmatpush.bf16.msrb.mxu0 %v2484_v33 }
 0x385   : > { %1392 = vmatpush.bf16.msrb.mxu0 %v2483_v35 }
 0x390   : > { %2314 = vmatmul.msk.bf16.vlgmr.msra.gmra.mxu0 %vm1108_vm8, %v1269_v39 }
 0x3a0   : > { %2332 = vmatmul.msk.bf16.vlgmr.msrb.gmra.mxu0 %vm963_vm3, %v2933_v46 }
 0x3fd   : > { %v1157_v42 = vpop.f32.mrf.mxu0 }
 0x3fe   : > { %v1161_v43 = vpack.c.bf16 %v1157_v42, %v1157_v42 }
 0x400   : > { %2318 = vmatmul.msk.bf16.vlgmr.msra.gmra.mxu3 %vm1108_vm8, %v1161_v43 }
 0x405   : > { %v1159_v44 = vpop.f32.mrf.mxu0 }
 0x40d   : > { %v1286_v45 = vpop.f32.mrf.mxu0 }
 0x40e   : > { %v1287_v47 = vadd.f32 %v1286_v45, %v2960_v13 }
 0x410   : > { %v1290_v48 = vsel %vm1108_vm8, %v1287_v47, -inf }
 0x411   : > { %1291 = vmax.xlane.f32.xlu2 %v1290_v48 }
 0x415   : > { %v1288_v49 = vpop.f32.mrf.mxu0 }
 0x41d   : > { %v1394_v50 = vpop.f32.mrf.mxu0 }
 0x41e   : > { %v1395_v17 = vadd.f32 %v2559_v12, %v1394_v50 }
 0x420   : > { %v1468_v21 = vmul.f32 0.35355338, %v1395_v17 }
 0x422   : > { %v1469_v24 = vpack.c.bf16 %v1468_v21, %v1468_v21 }
 0x425   : > { %v1396_v51 = vpop.f32.mrf.mxu0 }
 0x483   : > { %v2980_v52 = vpop.f32.mrf.mxu3 }
 0x484   : > { %v1292_v53 = vpop.xlane.xlu2 %1291 }
 0x485   : > { %v1293_v54 = vsub.f32 %v1287_v47, %v1292_v53 }
 0x487   : > { %v1294_v55 = vmul.f32 1.442695, %v1293_v54  ;;  %v2494_v54 = vld [vmem:[%s2852_s4 + $0x38] sm:$0xff] }
 0x489   : > { %2578 = vpow2.f32 %v1294_v55  ;;  %v2493_v55 = vld [vmem:[%s2852_s4 + $0x30] sm:$0xff] }
 0x48b   : > { %v1361_v56 = vpop.f32.mrf.mxu3 }
 0x48f   : > { %v2579_v57 = vpop.eup %2578 }
 0x490   : > { %v1296_v58 = vsel %vm1108_vm8, %v2579_v57, 0.0 }
 0x491   : > { %1297 = vadd.xlane.f32.xlu2 %v1296_v58 }
 0x504   : > { %v1298_v61 = vpop.xlane.xlu2 %1297 }
 0x505   : > { %2580 = vrcp.f32 %v1298_v61 }
 0x50b   : > { %v2581_v62 = vpop.eup %2580 }
 0x50c   : > { %v1300_v63 = vmul.f32 %v2581_v62, %v2579_v57  ;;  %v2562_v62 = vld [vmem:[%s3200_s7 + $0x3] ss:$0 sm:$0xff] }
 0x50e   : > { %v1301_v0 = vpack.c.bf16 %v1300_v63, %v1300_v63 }
 0x510   : > { %2315 = vmatmul.msk.bf16.vlgmr.msrb.gmra.mxu1 %vm1108_vm8, %v1301_v0 }
 0x511   : > { %1538 = vmatpush.bf16.msrb.mxu1 %v1529_v29 }
 0x520   : > { %2346 = vmatmul.msk.bf16.vlgmr.msra.gmra.mxu1 %vm963_vm3, %v2933_v46 }
 0x58d   : > { %v1318_v5 = vpop.f32.mrf.mxu1 }
 0x58e   : > { %v1322_v7 = vpack.c.bf16 %v1318_v5, %v1318_v5 }
 0x590   : > { %2317 = vmatmul.msk.bf16.vlgmr.msrb.gmra.mxu2 %vm1108_vm8, %v1322_v7 }
 0x591   : > { %1573 = vmatpush.bf16.msrb.mxu2 %v2490_v6 }
 0x595   : > { %v1320_v10 = vpop.f32.mrf.mxu1  ;;  %1574 = vmatpush.bf16.msrb.mxu2 %v2489_v9 }
 0x59d   : > { %v1429_v14 = vpop.f32.mrf.mxu1 }
 0x59e   : > { %v1430_v15 = vadd.f32 %v2560_v11, %v1429_v14 }
 0x5a0   : > { %v1470_v18 = vpack.c.bf16 %v1430_v15, %v1430_v15  ;;  %2360 = vmatmul.msk.bf16.vlgmr.msra.gmra.mxu2 %vm963_vm3, %v2933_v46 }
 0x5a2   : > { %v1475_v20 = vsel %vm1108_vm8, %v1470_v18, 0 }
 0x5a3   : > { %1484 = vmatpush.bf16.xpose.msrb.mxu3 %v1475_v20 }
 0x5a5   : > { %v1431_v23 = vpop.f32.mrf.mxu1 }
 0x5aa   : > { %2361 = vmatmul.msk.bf16.vlgmr.msrb.gmra.mxu3 %vm1108_vm8, %v1469_v24 }
 0x5ab   : > { %1608 = vmatpush.bf16.msra.mxu3 %v2492_v19 }
 0x5af   : > { %1609 = vmatpush.bf16.msra.mxu3 %v2491_v22 }
 0x5b0   : > { %2378 = vmatmul.msk.bf16.vlgmr.msrb.gmra.mxu2 %vm963_vm3, %v2933_v46 }
 0x5ba   : > { %2392 = vmatmul.msk.bf16.vlgmr.msra.gmra.mxu3 %vm963_vm3, %v2933_v46 }
 0x613   : > { %v1340_v25 = vpop.f32.mrf.mxu2 }
 0x61b   : > { %v1342_v26 = vpop.f32.mrf.mxu2 }
 0x623   : > { %v1464_v30 = vpop.f32.mrf.mxu2 }
 0x624   : > { %v1465_v31 = vadd.f32 %v2561_v27, %v1464_v30 }
 0x626   : > { %v1502_v32 = vpack.c.bf16 %v1465_v31, %v1465_v31 }
 0x628   : > { %v1507_v33 = vsel %vm1144_vm9, %v1502_v32, 0 }
 0x629   : > { %1516 = vmatpush.bf16.msra.mxu0 %v1507_v33  ;;  %v2565_v33 = vld [vmem:[%s3203_s5] ss:$0 sm:$0xff] }
 0x62b   : > { %v1466_v34 = vpop.f32.mrf.mxu2 }
 0x62d   : > { %v1486_v35 = vpop.f32.mrf.mxu3  ;;  %1643 = vmatpush.bf16.msrb.mxu0 %v2494_v54 }
 0x62e   : > { %v1487_v36 = vadd.f32 %v1486_v35, %v2960_v13 }
 0x630   : > { %v1490_v37 = vsel %vm1108_vm8, %v1487_v36, -inf }
 0x631   : > { %1491 = vmax.xlane.f32.xlu0 %v1490_v37  ;;  %1644 = vmatpush.bf16.msrb.mxu0 %v2493_v55  ;;  %v2566_v55 = vld [vmem:[%s3204_s9] ss:$0 sm:$0xff] }
 0x633   : > { %v1576_v38 = vpop.f32.mrf.mxu2 }
 0x634   : > { %v1577_v0 = vadd.f32 %v2562_v62, %v1576_v38  ;;  %v2504_v62 = vld [vmem:[%s2889_s23 + $0x38] sm:$0xff] }
 0x635   : > { %v1488_v39 = vpop.f32.mrf.mxu3 }
 0x636   : > { %v1650_v1 = vmul.f32 0.35355338, %v1577_v0  ;;  %v2502_v0 = vld [vmem:[%s2889_s23 + $0x28] sm:$0xff] }
 0x638   : > { %v1651_v4 = vpack.c.bf16 %v1650_v1, %v1650_v1  ;;  %v2501_v1 = vld [vmem:[%s2889_s23 + $0x20] sm:$0xff] }
 0x63b   : > { %v1578_v41 = vpop.f32.mrf.mxu2 }
 0x63d   : > { %v1611_v42 = vpop.f32.mrf.mxu3 }
 0x63e   : > { %v1612_v43 = vadd.f32 %v2563_v40, %v1611_v42 }
 0x640   : > { %v1652_v44 = vpack.c.bf16 %v1612_v43, %v1612_v43  ;;  %v2496_v43 = vld [vmem:[%s2880_s10 + $0x8] sm:$0xff] }
 0x642   : > { %v1657_v45 = vsel %vm1108_vm8, %v1652_v44, 0 }
 0x643   : > { %1666 = vmatpush.bf16.xpose.msra.mxu1 %v1657_v45 }
 0x645   : > { %v1613_v47 = vpop.f32.mrf.mxu3 }
 0x6a4   : > { %v1492_v48 = vpop.xlane.xlu0 %1491 }
 0x6a5   : > { %v1493_v49 = vsub.f32 %v1487_v36, %v1492_v48 }
 0x6a7   : > { %v1494_v50 = vmul.f32 1.442695, %v1493_v49 }
 0x6a9   : > { %2582 = vpow2.f32 %v1494_v50 }
 0x6af   : > { %v2583_v51 = vpop.eup %2582 }
 0x6b0   : > { %v1496_v53 = vsel %vm1108_vm8, %v2583_v51, 0.0 }
 0x6b1   : > { %1497 = vadd.xlane.f32.xlu1 %v1496_v53 }
 0x724   : > { %v1498_v56 = vpop.xlane.xlu1 %1497 }
 0x725   : > { %2584 = vrcp.f32 %v1498_v56 }
 0x72b   : > { %v2585_v57 = vpop.eup %2584 }
 0x72c   : > { %v1500_v58 = vmul.f32 %v2585_v57, %v2583_v51 }
 0x72e   : > { %v1501_v59 = vpack.c.bf16 %v1500_v58, %v1500_v58  ;;  %v2567_v58 = vld [vmem:[%s3206_s11] ss:$0 sm:$0xff] }
 0x730   : > { %2362 = vmatmul.msk.bf16.vlgmr.msra.gmra.mxu0 %vm1108_vm8, %v1501_v59 }
 0x731   : > { %1795 = vmatpush.bf16.msra.mxu0 %v2496_v43 }
 0x740   : > { %2406 = vmatmul.msk.bf16.vlgmr.msrb.gmra.mxu0 %vm963_vm3, %v2933_v46  ;;  %v1360_v46 = vadd.f32 %v2980_v52, %v1340_v25  ;;  %v2409_v52 = vld [vmem:[%s3202_s18 + $0xc] sm:$0xf] }
 0x741   : > { %v1711_v24 = vsel %vm1144_vm9, %v2409_v52, 0 }
 0x742   : > { %1720 = vmatpush.bf16.msrb.mxu3 %v1711_v24 }
 0x7ad   : > { %v1518_v60 = vpop.f32.mrf.mxu0 }
 0x7ae   : > { %v1522_v61 = vpack.c.bf16 %v1518_v60, %v1518_v60 }
 0x7b0   : > { %2364 = vmatmul.msk.bf16.vlgmr.msrb.gmra.mxu1 %vm1108_vm8, %v1522_v61 }
 0x7b1   : > { %1892 = vmatpush.bf16.msrb.mxu1 %v2504_v62 }
 0x7b5   : > { %v1520_v63 = vpop.f32.mrf.mxu0 }
 0x7b6   : > { %v2503_v63 = vld [vmem:[%s2889_s23 + $0x30] sm:$0xff] }
 0x7b7   : > { %1893 = vmatpush.bf16.msrb.mxu1 %v2503_v63 }
 0x7bb   : > { %1894 = vmatpush.bf16.msrb.mxu1 %v2502_v0 }
 0x7bd   : > { %v1646_v3 = vpop.f32.mrf.mxu0 }
 0x7be   : > { %v1647_v5 = vadd.f32 %v2564_v2, %v1646_v3  ;;  %v2500_v2 = vld [vmem:[%s2889_s23 + $0x18] sm:$0xff]  ;;  %v2499_v3 = vld [vmem:[%s2889_s23 + $0x10] sm:$0xff] }
 0x7bf   : > { %1895 = vmatpush.bf16.msrb.mxu1 %v2501_v1 }
 0x7c0   : > { %v1684_v6 = vpack.c.bf16 %v1647_v5, %v1647_v5  ;;  %2407 = vmatmul.msk.bf16.vlgmr.msra.gmra.mxu1 %vm1108_vm8, %v1651_v4  ;;  %v2568_v4 = vld [vmem:[%s929_s24] ss:$0 sm:$0xff]  ;;  %v2498_v5 = vld [vmem:[%s2889_s23 + $0x8] sm:$0xff] }
 0x7c2   : > { %v1689_v7 = vsel %vm1144_vm9, %v1684_v6, 0 }
 0x7c3   : > { %1698 = vmatpush.bf16.msra.mxu2 %v1689_v7  ;;  %1896 = vmatpush.bf16.msrb.mxu1 %v2500_v2 }
 0x7c5   : > { %v1648_v9 = vpop.f32.mrf.mxu0 }
 0x7c6   : > { %v2497_v9 = vld [vmem:[%s2889_s23] sm:$0xff] }
 0x7c7   : > { %1897 = vmatpush.bf16.msrb.mxu1 %v2499_v3 }
 0x7cb   : > { %1898 = vmatpush.bf16.msrb.mxu1 %v2498_v5 }
 0x7cf   : > { %1899 = vmatpush.bf16.msrb.mxu1 %v2497_v9 }
 0x82d   : > { %v1540_v10 = vpop.f32.mrf.mxu1 }
 0x82e   : > { %v1544_v11 = vadd.f32 %v1540_v10, %v1360_v46 }
 0x835   : > { %v1542_v12 = vpop.f32.mrf.mxu1 }
 0x83d   : > { %v1668_v14 = vpop.f32.mrf.mxu1 }
 0x83e   : > { %v1669_v15 = vadd.f32 %v1668_v14, %v2960_v13 }
 0x840   : > { %v1672_v17 = vsel %vm1108_vm8, %v1669_v15, -inf }
 0x841   : > { %1673 = vmax.xlane.f32.xlu2 %v1672_v17 }
 0x845   : > { %v1670_v18 = vpop.f32.mrf.mxu1 }
 0x8b4   : > { %v1674_v19 = vpop.xlane.xlu2 %1673 }
 0x8b5   : > { %v1675_v20 = vsub.f32 %v1669_v15, %v1674_v19 }
 0x8b7   : > { %v1676_v21 = vmul.f32 1.442695, %v1675_v20 }
 0x8b9   : > { %2586 = vpow2.f32 %v1676_v21 }
 0x8bf   : > { %v2587_v22 = vpop.eup %2586 }
 0x8c0   : > { %v1678_v23 = vsel %vm1108_vm8, %v2587_v22, 0.0 }
 0x8c1   : > { %1679 = vadd.xlane.f32.xlu0 %v1678_v23 }
 0x934   : > { %v1680_v25 = vpop.xlane.xlu0 %1679 }
 0x935   : > { %2588 = vrcp.f32 %v1680_v25 }
 0x93b   : > { %v2589_v13 = vpop.eup %2588 }
 0x93c   : > { %v1682_v26 = vmul.f32 %v2589_v13, %v2587_v22 }
 0x93e   : > { %v1683_v27 = vpack.c.bf16 %v1682_v26, %v1682_v26  ;;  %v2569_v26 = vld [vmem:[%s937_s1] ss:$0 sm:$0xff] }
 0x940   : > { %2408 = vmatmul.msk.bf16.vlgmr.msra.gmra.mxu2 %vm1108_vm8, %v1683_v27 }
 0x9c3   : > { %v1700_v28 = vpop.f32.mrf.mxu2 }
 0x9c4   : > { %v1704_v29 = vpack.c.bf16 %v1700_v28, %v1700_v28 }
 0x9c6   : > { %2410 = vmatmul.msk.bf16.vlgmr.msrb.gmra.mxu3 %vm1108_vm8, %v1704_v29 }
 0x9cb   : > { %v1702_v30 = vpop.f32.mrf.mxu2 }
 0xa49   : > { %v1722_v31 = vpop.f32.mrf.mxu3 }
 0xa4a   : > { %v1726_v32 = vadd.f32 %v1722_v31, %v1544_v11 }
 0xa4c   : > { %v1727_v34 = vadd.f32 %v1726_v32, %v2904_v8  ;;  %v2495_v8 = vld [vmem:[%s2880_s10] sm:$0xff]  ;;  %s3213_s10 = sld [smem:[#allocation34_spill]] (!%p2453_p8) }
 0xa4d   : > { %1796 = vmatpush.bf16.msra.mxu0 %v2495_v8 }
 0xa4e   : > { %v3040_v35 = vadd.f32 %v2565_v33, %v1727_v34 }
 0xa50   : > { %v1735_v36 = vsel %vm963_vm3, %v3040_v35, 0.0 }
 0xa51   : > { %1736 = vadd.xlane.f32.xlu1 %v1735_v36  ;;  %v1724_v37 = vpop.f32.mrf.mxu3 }
 0xac4   : > { %v1737_v38 = vpop.xlane.xlu1 %1736 }
 0xac5   : > { %v1738_v39 = vmul.f32 %v1737_v38, %v2908_v16 }
 0xac7   : > { %v1739_v40 = vsub.f32 %v3040_v35, %v1738_v39 }
 0xac9   : > { %v1740_v41 = vmul.f32 %v1739_v40, %v1739_v40 }
 0xacb   : > { %v1741_v42 = vsel %vm963_vm3, %v1740_v41, 0.0 }
 0xacc   : > { %1742 = vadd.xlane.f32.xlu2 %v1741_v42 }
 0xb3f   : > { %v1743_v44 = vpop.xlane.xlu2 %1742 }
 0xb40   : > { %v1744_v45 = vmul.f32 %v1743_v44, %v2908_v16 }
 0xb42   : > { %v1745_v47 = vadd.f32 1e-05, %v1744_v45 }
 0xb44   : > { %2590 = vrsqrt.f32 %v1745_v47  ;;  %vm1752_vm11 = vweird.f32 %v1745_v47 }
 0xb4a   : > { %v2591_v48 = vpop.eup %2590 }
 0xb4b   : > { %v1747_v49 = vmul.f32 %v2591_v48, %v1745_v47  ;;  %vm1753_vm10 = vweird.f32 %v2591_v48 }
 0xb4c   : > { %vm1754_vm12 = vmor %vm1752_vm11, %vm1753_vm10 }
 0xb4d   : > { %v1748_v50 = vmul.f32 %v2591_v48, %v1747_v49 }
 0xb4f   : > { %v1749_v51 = vmul.f32 0.5, %v1748_v50 }
 0xb51   : > { %v1750_v53 = vsub.f32 1.5, %v1749_v51 }
 0xb53   : > { %v1751_v54 = vmul.f32 %v2591_v48, %v1750_v53 }
 0xb55   : > { %v1755_v56 = vsel %vm1754_vm12, %v2591_v48, %v1751_v54 }
 0xb56   : > { %v1756_v57 = vmul.f32 %v1755_v56, %v1739_v40 }
 0xb58   : > { %v1760_v59 = vmul.f32 %v2566_v55, %v1756_v57 }
 0xb5a   : > { %v1764_v60 = vadd.f32 %v2567_v58, %v1760_v59 }
 0xb5c   : > { %v1765_v61 = vpack.c.bf16 %v1764_v60, %v1764_v60 }
 0xb5e   : > { %2419 = vmatmul.msk.bf16.vlgmr.msra.gmra.mxu0 %vm963_vm3, %v1765_v61 }
 0xbdb   : > { %v1798_v6 = vpop.f32.mrf.mxu0 }
 0xbdc   : > { %v1799_v7 = vadd.f32 %v2568_v4, %v1798_v6 }
 0xbde   : > { %v2420_v46 = vmul.f32 -1.702, %v1799_v7 }
 0xbe0   : > { %v1804_v10 = vmul.f32 1.442695, %v2420_v46 }
 0xbe2   : > { %2592 = vpow2.f32 %v1804_v10 }
 0xbe3   : > { %v1800_v11 = vpop.f32.mrf.mxu0 }
 0xbe8   : > { %v2593_v12 = vpop.eup %2592 }
 0xbe9   : > { %v1806_v14 = vadd.f32 1.0, %v2593_v12 }
 0xbeb   : > { %2594 = vrcp.f32 %v1806_v14  ;;  %v1818_v19 = vand.u32 2147483648, %v1806_v14  ;;  %v1816_v21 = vand.u32 2147483647, %v1806_v14  ;;  %vm1812_vm14 = vweird.f32 %v1806_v14 }
 0xbed   : > { %v1819_v23 = vor.u32 1.1754944e-38, %v1818_v19  ;;  %vm1817_vm0 = vcmp.eq.f32.partialorder %v1816_v21, 8.507059e+37 }
 0xbf1   : > { %v2595_v15 = vpop.eup %2594 }
 0xbf2   : > { %v1808_v17 = vmul.f32 %v2595_v15, %v1806_v14  ;;  %vm1813_vm13 = vweird.f32 %v2595_v15 }
 0xbf3   : > { %vm1814_vm15 = vmor %vm1812_vm14, %vm1813_vm13 }
 0xbf4   : > { %v1809_v18 = vsub.f32 1.0, %v1808_v17 }
 0xbf6   : > { %v1810_v20 = vmul.f32 %v2595_v15, %v1809_v18 }
 0xbf8   : > { %v1811_v22 = vadd.f32 %v2595_v15, %v1810_v20 }
 0xbfa   : > { %v1815_v52 = vsel %vm1814_vm15, %v2595_v15, %v1811_v22 }
 0xbfb   : > { %v1820_v24 = vsel %vm1817_vm0, %v1819_v23, %v1815_v52 }
 0xbfc   : > { %v1822_v25 = vmul.f32 %v1820_v24, %v1799_v7 }
 0xbfe   : > { %v1823_v13 = vpack.c.bf16 %v1822_v25, %v1822_v25 }
 0xc00   : > { %1900 = vmatmul.bf16.vlgmr.msrb.gmra.mxu1 %v1823_v13 }
 0xc7d   : > { %v1901_v27 = vpop.f32.mrf.mxu1 }
 0xc7e   : > { %v1902_v28 = vadd.f32 %v2569_v26, %v1901_v27 }
 0xc80   : > { %v1905_v29 = vadd.f32 %v1902_v28, %v3040_v35 }
 0xc81   : > { %1910 = sbr.rel (%p2453_p8) target bundleno = 3622 (0xe26), region = 112 }
 0xc82   : > { %1906 = vst.msk [vmem:[#allocation2] sm:$0xff] %vm963_vm3, %v1905_v29 }
 0xc85   : > { %v1903_v30 = vpop.f32.mrf.mxu1 }
 0xc86   : > { %v2657_v31 = vmov 0.0   ;;  %vm1915_vm1 = vcmask 253952   ;;  %v2506_v40 = vld [vmem:[%s3211_s29 + $0x8] sm:$0xff]  ;;  %v2505_v41 = vld [vmem:[%s3211_s29] sm:$0xff] }
 0xc87   : > { %1911 = vst.msk [vmem:[#allocation4] sm:$0xff] %vm963_vm3, %v2657_v31  ;;  %1976 = vmatpush.bf16.msra.mxu0 %v2506_v40  ;;  %v2596_v51 = vld [vmem:[%s3212_s30] ss:$0 sm:$0xff] }
 0xc89   : > { %v1914_v32 = vld [vmem:[%s1913_s3] sm:$0x1] }
 0xc8a   : > { %1916 = vst.msk [vmem:[#allocation4] sm:$0x1] %vm1915_vm1, %v1914_v32 }
 0xc8b   : > { %1977 = vmatpush.bf16.msra.mxu0 %v2505_v41 }
 0xc91   : > { %v1917_v33 = vld [vmem:[#allocation4] sm:$0xff] }
 0xc92   : > { %v1920_v34 = vsel %vm963_vm3, %v1917_v33, 0.0 }
 0xc93   : > { %1921 = vadd.xlane.f32.xlu0 %v1920_v34 }
 0xd06   : > { %v1922_v35 = vpop.xlane.xlu0 %1921 }
 0xd07   : > { %v1923_v36 = vmul.f32 %v1922_v35, %v2908_v16 }
 0xd09   : > { %v1924_v37 = vsub.f32 %v1917_v33, %v1923_v36 }
 0xd0b   : > { %v1925_v38 = vmul.f32 %v1924_v37, %v1924_v37 }
 0xd0d   : > { %v1926_v39 = vsel %vm963_vm3, %v1925_v38, 0.0 }
 0xd0e   : > { %1927 = vadd.xlane.f32.xlu0 %v1926_v39 }
 0xd81   : > { %v1928_v42 = vpop.xlane.xlu0 %1927 }
 0xd82   : > { %v1929_v43 = vmul.f32 %v1928_v42, %v2908_v16  ;;  %v2597_v16 = vld [vmem:[%s3213_s10] ss:$0 sm:$0xff] }
 0xd84   : > { %v1930_v8 = vadd.f32 1e-05, %v1929_v43 }
 0xd86   : > { %2598 = vrsqrt.f32 %v1930_v8  ;;  %vm1937_vm4 = vweird.f32 %v1930_v8 }
 0xd8c   : > { %v2599_v44 = vpop.eup %2598 }
 0xd8d   : > { %v1932_v45 = vmul.f32 %v2599_v44, %v1930_v8  ;;  %vm1938_vm2 = vweird.f32 %v2599_v44 }
 0xd8e   : > { %vm1939_vm5 = vmor %vm1937_vm4, %vm1938_vm2 }
 0xd8f   : > { %v1933_v47 = vmul.f32 %v2599_v44, %v1932_v45 }
 0xd91   : > { %v1934_v48 = vmul.f32 0.5, %v1933_v47 }
 0xd93   : > { %v1935_v49 = vsub.f32 1.5, %v1934_v48 }
 0xd95   : > { %v1936_v50 = vmul.f32 %v2599_v44, %v1935_v49 }
 0xd97   : > { %v1940_v53 = vsel %vm1939_vm5, %v2599_v44, %v1936_v50 }
 0xd98   : > { %v1941_v54 = vmul.f32 %v1940_v53, %v1924_v37 }
 0xd9a   : > { %v1945_v55 = vmul.f32 %v2596_v51, %v1941_v54 }
 0xd9c   : > { %v1949_v56 = vadd.f32 %v2597_v16, %v1945_v55 }
 0xd9e   : > { %v1950_v57 = vpack.c.bf16 %v1949_v56, %v1949_v56 }
 0xda0   : > { %2462 = vmatmul.msk.bf16.vlgmr.msra.gmra.mxu0 %vm963_vm3, %v1950_v57 }
 0xe1d   : > { %v1979_v58 = vpop.f32.mrf.mxu0 }
 0xe1e   : > { %1983 = vst.msk [vmem:[%s2898_s14] sm:$0xff] %vm963_vm3, %v1979_v58 }
 0xe25   : > { %v1981_v59 = vpop.f32.mrf.mxu0 }
 0xe26 PF: > { %s3214_s9 = sld [smem:[#allocation12_spill]] }
 0xe27   : > { %s3215_s4 = sld [smem:[#allocation10_spill]] }
 0xe28   : > { %s3216_s0 = sld [smem:[#allocation11_spill]] }
 0xe29   : > { %s3217_s23 = sld [smem:[#allocation13_spill]] }
 0xe2a   : > { %s3218_s1 = sld [smem:[#allocation14_spill]] }
 0xe2c   : > { %s40_s5 = sadd.s32 1, %s3214_s9  }
 0xe2d   : > { %p37_p9 = scmp.ge.s32.totalorder %s40_s5, 6  }
 0xe2f   :  { %39 = sbr.rel (!%p37_p9) target bundleno = 34 (0x22), region = 212 }

</bundles_post_ra>
